<compile_context>
chip_gen: v5e
topology: v5e:2x2
jax: 0.10.0
libtpu: 0.0.40
codegen_flags: <defaults>
</compile_context>

<pallas_src>
import functools

import jax
import jax.numpy as jnp
import numpy as np
from jax import lax
from jax.experimental import pallas as pl
from jax.experimental.pallas import tpu as pltpu


def _round_up(x, m):
    return (x + m - 1) // m * m


def _dsconv_kernel(x_hbm, wdw_ref, wpw_ref, bias_ref, o_ref,
                   xbuf, sem, *, kh, kw, stride, row_tile):
    """One (batch, H-tile) grid step.

    x_hbm  : (B, Hp, Wp_p, Cin_p)  full padded NHWC input, left in HBM (pl.ANY)
    wdw_ref: (kh*kw, Cin_p)        depthwise weights, row = ki*kw + kj
    wpw_ref: (Cin_p, Cout_p)       pointwise (1x1 conv) weights
    bias_ref:(1, Cout_p)           effective bias = b_pw + W_pw @ b_dw  (f32)
    o_ref  : (1, row_tile, Wo, Cout_p)
    xbuf   : (2, th_in, Wp_p, Cin_p) VMEM double buffer for the input row slab
    sem    : (2,) DMA semaphores
    """
    b = pl.program_id(0)
    h = pl.program_id(1)
    nh = pl.num_programs(1)

    th_in = (row_tile - 1) * stride + kh      # input rows needed per output tile
    row_step = row_tile * stride              # input-row step between H tiles

    def start_fetch(batch_idx, tile_idx, slot_idx):
        pltpu.make_async_copy(
            x_hbm.at[batch_idx, pl.ds(tile_idx * row_step, th_in)],
            xbuf.at[slot_idx],
            sem.at[slot_idx],
        ).start()

    slot = lax.rem(h, 2)

    # Prime the double buffer at the start of each batch row.
    @pl.when(h == 0)
    def _():
        start_fetch(b, 0, 0)

    # Prefetch the next H tile into the other slot while this one computes.
    @pl.when(h + 1 < nh)
    def _():
        start_fetch(b, h + 1, 1 - slot)

    # Wait for the current slab (descriptor only needs matching dst/sem).
    pltpu.make_async_copy(
        x_hbm.at[b, pl.ds(0, th_in)], xbuf.at[slot], sem.at[slot]
    ).wait()

    wo = o_ref.shape[2]
    cin_p = xbuf.shape[-1]

    xv = xbuf.at[slot]             # view of the current (th_in, Wp_p, Cin_p) slab
    w_dw = wdw_ref[...]            # hoisted: load all kh*kw taps once

    # ---- depthwise conv: kh*kw-tap multiply-accumulate, f32 accumulator ----
    # Each tap is read directly from the VMEM slab (only the patch it needs).
    acc = None
    for ki in range(kh):
        for kj in range(kw):
            if stride == 1:
                patch = xv[ki:ki + row_tile, kj:kj + wo, :]
            else:
                patch = xv[pl.ds(ki, row_tile, stride),
                           pl.ds(kj, wo, stride), :]
            term = (patch * w_dw[ki * kw + kj, :]).astype(jnp.float32)
            acc = term if acc is None else acc + term

    # ---- pointwise 1x1 conv: (row_tile*Wo, Cin_p) @ (Cin_p, Cout_p) on MXU ----
    dw = acc.astype(xbuf.dtype).reshape(row_tile * wo, cin_p)
    out = jnp.dot(dw, wpw_ref[...], preferred_element_type=jnp.float32)
    out = out + bias_ref[0, :]     # depthwise bias already folded in here

    o_ref[0] = out.reshape(row_tile, wo, -1).astype(o_ref.dtype)


def ds_conv2d(x_nchw, w_dw, b_dw, w_pw, b_pw, *, stride=1, padding=0,
              row_tile=None):
    """Pallas depthwise-separable conv.

    x_nchw: (B, Cin, H, W)   -- PyTorch NCHW input
    w_dw  : (Cin, 1, KH, KW) -- depthwise conv weight (PyTorch layout)
    b_dw  : (Cin,)
    w_pw  : (Cout, Cin, 1, 1)-- pointwise conv weight (PyTorch layout)
    b_pw  : (Cout,)
    returns (B, Cout, Ho, Wo) in NCHW.
    """
    B, Cin, H, W = map(int, x_nchw.shape)
    KH, KW = int(w_dw.shape[2]), int(w_dw.shape[3])
    Cout = int(w_pw.shape[0])
    dt = x_nchw.dtype
    itemsize = np.dtype(dt).itemsize

    Hp = H + 2 * padding
    Wp = W + 2 * padding
    Ho = (Hp - KH) // stride + 1
    Wo = (Wp - KW) // stride + 1

    # Lane-dense channel padding and sublane-friendly W padding.
    Cin_p = _round_up(Cin, 128)
    Cout_p = _round_up(Cout, 128)
    Wp_p = _round_up(Wp, 8)

    # Row tile sized against a conservative VMEM budget (double-buffered input
    # slab + double-buffered output block + f32 accumulator), safe for v7x.
    if row_tile is None:
        budget = 20 * 1024 * 1024
        per_out_row = (2 * stride * Wp_p * Cin_p * itemsize   # 2x input slab
                       + 2 * Wo * Cout_p * itemsize           # 2x output block
                       + Wo * Cin_p * 4)                      # f32 accumulator
        row_tile = max(8, budget // max(per_out_row, 1))
    row_tile = int(max(1, min(row_tile, Ho)))

    NH = pl.cdiv(Ho, row_tile)
    Ho_p = NH * row_tile
    th_in = (row_tile - 1) * stride + KH
    rows_needed = (Ho_p - 1) * stride + KH      # input rows touched by any tile

    # NCHW -> NHWC and a single fused pad (conv halo + tail tile + lane padding).
    # TODO(synk): expose an NHWC-native entry point so the two transposes and
    # this pad (extra HBM passes) disappear when the surrounding model is NHWC.
    x = jnp.transpose(x_nchw, (0, 2, 3, 1))
    pad_bottom = max(rows_needed - (H + padding), 0)
    x = jnp.pad(x, ((0, 0),
                    (padding, pad_bottom),
                    (padding, Wp_p - (W + padding)),
                    (0, Cin_p - Cin)))

    # Repack weights: depthwise -> (KH*KW, Cin_p); pointwise -> (Cin_p, Cout_p).
    # Padded channels get zero weights so they contribute exactly 0.
    wdw = jnp.transpose(w_dw[:, 0], (1, 2, 0)).reshape(KH * KW, Cin)
    wdw = jnp.pad(wdw, ((0, 0), (0, Cin_p - Cin))).astype(dt)
    wpw_mat = w_pw[:, :, 0, 0]                                  # (Cout, Cin)
    wpw = jnp.pad(jnp.transpose(wpw_mat, (1, 0)),
                  ((0, Cin_p - Cin), (0, Cout_p - Cout))).astype(dt)
    # Fold the depthwise bias through the (linear) pointwise conv:
    #   (dw + b_dw) @ W + b_pw == dw @ W + (b_pw + W @ b_dw)
    b_eff = (b_pw.astype(jnp.float32)
             + wpw_mat.astype(jnp.float32) @ b_dw.astype(jnp.float32))
    b_eff = jnp.pad(b_eff, (0, Cout_p - Cout)).reshape(1, Cout_p)

    kernel = functools.partial(_dsconv_kernel, kh=KH, kw=KW, stride=stride,
                               row_tile=row_tile)

    flops = 2 * B * Ho * Wo * Cin * (KH * KW + Cout)
    bytes_accessed = (x.size * itemsize
                      + wdw.size * itemsize + wpw.size * itemsize
                      + b_eff.size * 4
                      + B * Ho_p * Wo * Cout_p * itemsize)

    out_nhwc = pl.pallas_call(
        kernel,
        out_shape=jax.ShapeDtypeStruct((B, Ho_p, Wo, Cout_p), dt),
        grid=(B, NH),
        in_specs=[
            pl.BlockSpec(memory_space=pl.ANY),                    # x stays in HBM
            pl.BlockSpec((KH * KW, Cin_p), lambda b, h: (0, 0)),
            pl.BlockSpec((Cin_p, Cout_p), lambda b, h: (0, 0)),
            pl.BlockSpec((1, Cout_p), lambda b, h: (0, 0)),
        ],
        out_specs=pl.BlockSpec((1, row_tile, Wo, Cout_p),
                               lambda b, h: (b, h, 0, 0)),
        scratch_shapes=[
            pltpu.VMEM((2, th_in, Wp_p, Cin_p), dt),
            pltpu.SemaphoreType.DMA((2,)),
        ],
        compiler_params=pltpu.CompilerParams(
            dimension_semantics=("parallel", "arbitrary"),
            vmem_limit_bytes=32 * 1024 * 1024),
        cost_estimate=pl.CostEstimate(flops=int(flops), transcendentals=0,
                                      bytes_accessed=int(bytes_accessed)),
    )(x, wdw, wpw, b_eff)

    # Drop row/channel padding, NHWC -> NCHW to match the PyTorch module.
    return jnp.transpose(out_nhwc[:, :Ho, :, :Cout], (0, 3, 1, 2))


def _reference(x_nchw, w_dw, b_dw, w_pw, b_pw, *, stride, padding):
    """Pure-JAX reference (lax.conv) mirroring the PyTorch module."""
    cin = x_nchw.shape[1]
    dn = ("NCHW", "OIHW", "NCHW")
    dw = lax.conv_general_dilated(
        x_nchw.astype(jnp.float32), w_dw.astype(jnp.float32),
        window_strides=(stride, stride),
        padding=((padding, padding), (padding, padding)),
        dimension_numbers=dn, feature_group_count=cin)
    dw = dw + b_dw.reshape(1, -1, 1, 1)
    pw = lax.conv_general_dilated(
        dw, w_pw.astype(jnp.float32),
        window_strides=(1, 1), padding=((0, 0), (0, 0)),
        dimension_numbers=dn)
    return pw + b_pw.reshape(1, -1, 1, 1)


def _run_case(key, B, Cin, Cout, H, W, K, PAD, STRIDE, row_tile):
    kx, kdw, kbdw, kpw, kbpw = jax.random.split(key, 5)
    x = jax.random.normal(kx, (B, Cin, H, W), jnp.float32)
    w_dw = jax.random.normal(kdw, (Cin, 1, K, K), jnp.float32) * 0.1
    b_dw = jax.random.normal(kbdw, (Cin,), jnp.float32) * 0.1
    w_pw = jax.random.normal(kpw, (Cout, Cin, 1, 1), jnp.float32) * 0.1
    b_pw = jax.random.normal(kbpw, (Cout,), jnp.float32) * 0.1

    out = ds_conv2d(x, w_dw, b_dw, w_pw, b_pw, stride=STRIDE, padding=PAD,
                    row_tile=row_tile)
    out = jax.block_until_ready(out)

    ref = _reference(x, w_dw, b_dw, w_pw, b_pw, stride=STRIDE, padding=PAD)
    np.testing.assert_allclose(np.asarray(out), np.asarray(ref),
                               rtol=1e-4, atol=1e-4)
    Ho = (H + 2 * PAD - K) // STRIDE + 1
    Wo = (W + 2 * PAD - K) // STRIDE + 1
    assert out.shape == (B, Cout, Ho, Wo)


if __name__ == "__main__":
    key = jax.random.PRNGKey(0)
    k1, k2 = jax.random.split(key)

    # Module config (small, consistent with DsConv2d(dim_in, dim_out, k, p)).
    # row_tile=8 -> 2 H-tiles per image: exercises the halo DMA + double buffer.
    _run_case(k1, B=2, Cin=4, Cout=8, H=16, W=16, K=3, PAD=1, STRIDE=1,
              row_tile=8)
    # Auto row_tile (single H tile) with non-power-of-two channel counts.
    _run_case(k2, B=1, Cin=6, Cout=10, H=12, W=12, K=3, PAD=1, STRIDE=1,
              row_tile=None)

    print("KERNEL_OK")
</pallas_src>

<mosaic_0001>
module attributes {stable_mosaic.version = 11 : i64} {
  func.func @_dsconv_kernel(%arg0: i32, %arg1: i32, %arg2: memref<2x18x24x128xf32, #tpu.memory_space<any>>, %arg3: memref<9x128xf32, #tpu.memory_space<vmem>>, %arg4: memref<128x128xf32, #tpu.memory_space<vmem>>, %arg5: memref<1x128xf32, #tpu.memory_space<vmem>>, %arg6: memref<1x8x16x128xf32, #tpu.memory_space<vmem>>, %arg7: memref<2x10x24x128xf32, #tpu.memory_space<vmem>>, %arg8: memref<2x!tpu.dma_semaphore, #tpu.memory_space<semaphore_mem>>) attributes {dimension_semantics = [#tpu.dimension_semantics<parallel>, #tpu.dimension_semantics<arbitrary>], iteration_bounds = array<i64: 2, 2>, scalar_prefetch = 0 : i64, scratch_operands = 2 : i64, tpu.core_type = #tpu.core_type<tc>, window_params = [{}, {pipeline_mode = #tpu.pipeline_mode<synchronous>, transform_indices = @transform_1, window_bounds = array<i64: 9, 128>}, {pipeline_mode = #tpu.pipeline_mode<synchronous>, transform_indices = @transform_2, window_bounds = array<i64: 128, 128>}, {pipeline_mode = #tpu.pipeline_mode<synchronous>, transform_indices = @transform_3, window_bounds = array<i64: 1, 128>}, {transform_indices = @transform_4, window_bounds = array<i64: 1, 8, 16, 128>}]} {
    %c2_i32 = arith.constant 2 : i32
    %0 = arith.remsi %arg1, %c2_i32 : i32
    %c0_i32 = arith.constant 0 : i32
    %1 = arith.cmpi eq, %arg1, %c0_i32 : i32
    %2 = arith.extui %1 : i1 to i32
    %c0_i32_0 = arith.constant 0 : i32
    %3 = arith.cmpi ne, %2, %c0_i32_0 : i32
    scf.if %3 {
      %c0_i32_70 = arith.constant 0 : i32
      %c0_i32_71 = arith.constant 0 : i32
      %c0_i32_72 = arith.constant 0 : i32
      %c0_i32_73 = arith.constant 0 : i32
      %c0_i32_74 = arith.constant 0 : i32
      %107 = tpu.memref_slice %arg2[%arg0, %c0_i32_72, %c0_i32_73, %c0_i32_74] : memref<2x18x24x128xf32, #tpu.memory_space<any>> -> memref<1x10x24x128xf32, #tpu.memory_space<any>>
      %108 = tpu.memref_squeeze %107 : memref<1x10x24x128xf32, #tpu.memory_space<any>> -> memref<10x24x128xf32, #tpu.memory_space<any>>
      %c0_i32_75 = arith.constant 0 : i32
      %c0_i32_76 = arith.constant 0 : i32
      %c0_i32_77 = arith.constant 0 : i32
      %109 = tpu.memref_slice %arg7[%c0_i32_70, %c0_i32_75, %c0_i32_76, %c0_i32_77] : memref<2x10x24x128xf32, #tpu.memory_space<vmem>> -> memref<1x10x24x128xf32, #tpu.memory_space<vmem>>
      %110 = tpu.memref_squeeze %109 : memref<1x10x24x128xf32, #tpu.memory_space<vmem>> -> memref<10x24x128xf32, #tpu.memory_space<vmem>>
      %111 = tpu.memref_slice %arg8[%c0_i32_71] : memref<2x!tpu.dma_semaphore, #tpu.memory_space<semaphore_mem>> -> memref<1x!tpu.dma_semaphore, #tpu.memory_space<semaphore_mem>>
      %112 = tpu.memref_squeeze %111 : memref<1x!tpu.dma_semaphore, #tpu.memory_space<semaphore_mem>> -> memref<!tpu.dma_semaphore, #tpu.memory_space<semaphore_mem>>
      tpu.enqueue_dma source(%108 : memref<10x24x128xf32, #tpu.memory_space<any>>) target(%110 : memref<10x24x128xf32, #tpu.memory_space<vmem>>) target_semaphore(%112 : memref<!tpu.dma_semaphore, #tpu.memory_space<semaphore_mem>>)
    } else {
    }
    %c1_i32 = arith.constant 1 : i32
    %4 = arith.addi %arg1, %c1_i32 : i32
    %c2_i32_1 = arith.constant 2 : i32
    %5 = arith.cmpi slt, %4, %c2_i32_1 : i32
    %6 = arith.extui %5 : i1 to i32
    %c0_i32_2 = arith.constant 0 : i32
    %7 = arith.cmpi ne, %6, %c0_i32_2 : i32
    scf.if %7 {
      %c1_i32_70 = arith.constant 1 : i32
      %107 = arith.addi %arg1, %c1_i32_70 : i32
      %c1_i32_71 = arith.constant 1 : i32
      %108 = arith.subi %c1_i32_71, %0 : i32
      %c8_i32 = arith.constant 8 : i32
      %109 = arith.muli %107, %c8_i32 : i32
      %c0_i32_72 = arith.constant 0 : i32
      %c0_i32_73 = arith.constant 0 : i32
      %110 = tpu.memref_slice %arg2[%arg0, %109, %c0_i32_72, %c0_i32_73] : memref<2x18x24x128xf32, #tpu.memory_space<any>> -> memref<1x10x24x128xf32, #tpu.memory_space<any>>
      %111 = tpu.memref_squeeze %110 : memref<1x10x24x128xf32, #tpu.memory_space<any>> -> memref<10x24x128xf32, #tpu.memory_space<any>>
      %c0_i32_74 = arith.constant 0 : i32
      %c0_i32_75 = arith.constant 0 : i32
      %c0_i32_76 = arith.constant 0 : i32
      %112 = tpu.memref_slice %arg7[%108, %c0_i32_74, %c0_i32_75, %c0_i32_76] : memref<2x10x24x128xf32, #tpu.memory_space<vmem>> -> memref<1x10x24x128xf32, #tpu.memory_space<vmem>>
      %113 = tpu.memref_squeeze %112 : memref<1x10x24x128xf32, #tpu.memory_space<vmem>> -> memref<10x24x128xf32, #tpu.memory_space<vmem>>
      %114 = tpu.memref_slice %arg8[%108] : memref<2x!tpu.dma_semaphore, #tpu.memory_space<semaphore_mem>> -> memref<1x!tpu.dma_semaphore, #tpu.memory_space<semaphore_mem>>
      %115 = tpu.memref_squeeze %114 : memref<1x!tpu.dma_semaphore, #tpu.memory_space<semaphore_mem>> -> memref<!tpu.dma_semaphore, #tpu.memory_space<semaphore_mem>>
      tpu.enqueue_dma source(%111 : memref<10x24x128xf32, #tpu.memory_space<any>>) target(%113 : memref<10x24x128xf32, #tpu.memory_space<vmem>>) target_semaphore(%115 : memref<!tpu.dma_semaphore, #tpu.memory_space<semaphore_mem>>)
    } else {
    }
    %c0_i32_3 = arith.constant 0 : i32
    %c0_i32_4 = arith.constant 0 : i32
    %c0_i32_5 = arith.constant 0 : i32
    %8 = tpu.memref_slice %arg2[%arg0, %c0_i32_3, %c0_i32_4, %c0_i32_5] : memref<2x18x24x128xf32, #tpu.memory_space<any>> -> memref<1x10x24x128xf32, #tpu.memory_space<any>>
    %9 = tpu.memref_squeeze %8 : memref<1x10x24x128xf32, #tpu.memory_space<any>> -> memref<10x24x128xf32, #tpu.memory_space<any>>
    %c0_i32_6 = arith.constant 0 : i32
    %c0_i32_7 = arith.constant 0 : i32
    %c0_i32_8 = arith.constant 0 : i32
    %10 = tpu.memref_slice %arg7[%0, %c0_i32_6, %c0_i32_7, %c0_i32_8] : memref<2x10x24x128xf32, #tpu.memory_space<vmem>> -> memref<1x10x24x128xf32, #tpu.memory_space<vmem>>
    %11 = tpu.memref_squeeze %10 : memref<1x10x24x128xf32, #tpu.memory_space<vmem>> -> memref<10x24x128xf32, #tpu.memory_space<vmem>>
    %12 = tpu.memref_slice %arg8[%0] : memref<2x!tpu.dma_semaphore, #tpu.memory_space<semaphore_mem>> -> memref<1x!tpu.dma_semaphore, #tpu.memory_space<semaphore_mem>>
    %13 = tpu.memref_squeeze %12 : memref<1x!tpu.dma_semaphore, #tpu.memory_space<semaphore_mem>> -> memref<!tpu.dma_semaphore, #tpu.memory_space<semaphore_mem>>
    tpu.wait_dma2 semaphore(%13 : memref<!tpu.dma_semaphore, #tpu.memory_space<semaphore_mem>>) src(%9 : memref<10x24x128xf32, #tpu.memory_space<any>>) dst(%11 : memref<10x24x128xf32, #tpu.memory_space<vmem>>)
    %c0 = arith.constant 0 : index
    %c0_9 = arith.constant 0 : index
    %14 = vector.load %arg3[%c0, %c0_9] : memref<9x128xf32, #tpu.memory_space<vmem>>, vector<9x128xf32>
    %c0_i32_10 = arith.constant 0 : i32
    %c0_i32_11 = arith.constant 0 : i32
    %c0_i32_12 = arith.constant 0 : i32
    %15 = tpu.memref_slice %arg7[%0, %c0_i32_10, %c0_i32_11, %c0_i32_12] : memref<2x10x24x128xf32, #tpu.memory_space<vmem>> -> memref<1x10x24x128xf32, #tpu.memory_space<vmem>>
    %16 = tpu.memref_squeeze %15 : memref<1x10x24x128xf32, #tpu.memory_space<vmem>> -> memref<10x24x128xf32, #tpu.memory_space<vmem>>
    %c0_13 = arith.constant 0 : index
    %c0_14 = arith.constant 0 : index
    %c0_15 = arith.constant 0 : index
    %17 = vector.load %16[%c0_13, %c0_14, %c0_15] : memref<10x24x128xf32, #tpu.memory_space<vmem>>, vector<8x16x128xf32>
    %18 = vector.extract_strided_slice %14 {offsets = [0, 0], sizes = [1, 128], strides = [1, 1]} : vector<9x128xf32> to vector<1x128xf32>
    %19 = vector.shape_cast %18 : vector<1x128xf32> to vector<128xf32>
    %20 = vector.shape_cast %19 : vector<128xf32> to vector<1x1x128xf32>
    %21 = vector.broadcast %20 : vector<1x1x128xf32> to vector<8x16x128xf32>
    %22 = arith.mulf %17, %21 : vector<8x16x128xf32>
    %c0_i32_16 = arith.constant 0 : i32
    %c0_i32_17 = arith.constant 0 : i32
    %c0_i32_18 = arith.constant 0 : i32
    %23 = tpu.memref_slice %arg7[%0, %c0_i32_16, %c0_i32_17, %c0_i32_18] : memref<2x10x24x128xf32, #tpu.memory_space<vmem>> -> memref<1x10x24x128xf32, #tpu.memory_space<vmem>>
    %24 = tpu.memref_squeeze %23 : memref<1x10x24x128xf32, #tpu.memory_space<vmem>> -> memref<10x24x128xf32, #tpu.memory_space<vmem>>
    %c0_19 = arith.constant 0 : index
    %c1 = arith.constant 1 : index
    %c0_20 = arith.constant 0 : index
    %25 = vector.load %24[%c0_19, %c1, %c0_20] : memref<10x24x128xf32, #tpu.memory_space<vmem>>, vector<8x16x128xf32>
    %26 = vector.extract_strided_slice %14 {offsets = [1, 0], sizes = [1, 128], strides = [1, 1]} : vector<9x128xf32> to vector<1x128xf32>
    %27 = vector.shape_cast %26 : vector<1x128xf32> to vector<128xf32>
    %28 = vector.shape_cast %27 : vector<128xf32> to vector<1x1x128xf32>
    %29 = vector.broadcast %28 : vector<1x1x128xf32> to vector<8x16x128xf32>
    %30 = arith.mulf %25, %29 : vector<8x16x128xf32>
    %31 = arith.addf %22, %30 : vector<8x16x128xf32>
    %c0_i32_21 = arith.constant 0 : i32
    %c0_i32_22 = arith.constant 0 : i32
    %c0_i32_23 = arith.constant 0 : i32
    %32 = tpu.memref_slice %arg7[%0, %c0_i32_21, %c0_i32_22, %c0_i32_23] : memref<2x10x24x128xf32, #tpu.memory_space<vmem>> -> memref<1x10x24x128xf32, #tpu.memory_space<vmem>>
    %33 = tpu.memref_squeeze %32 : memref<1x10x24x128xf32, #tpu.memory_space<vmem>> -> memref<10x24x128xf32, #tpu.memory_space<vmem>>
    %c0_24 = arith.constant 0 : index
    %c2 = arith.constant 2 : index
    %c0_25 = arith.constant 0 : index
    %34 = vector.load %33[%c0_24, %c2, %c0_25] : memref<10x24x128xf32, #tpu.memory_space<vmem>>, vector<8x16x128xf32>
    %35 = vector.extract_strided_slice %14 {offsets = [2, 0], sizes = [1, 128], strides = [1, 1]} : vector<9x128xf32> to vector<1x128xf32>
    %36 = vector.shape_cast %35 : vector<1x128xf32> to vector<128xf32>
    %37 = vector.shape_cast %36 : vector<128xf32> to vector<1x1x128xf32>
    %38 = vector.broadcast %37 : vector<1x1x128xf32> to vector<8x16x128xf32>
    %39 = arith.mulf %34, %38 : vector<8x16x128xf32>
    %40 = arith.addf %31, %39 : vector<8x16x128xf32>
    %c0_i32_26 = arith.constant 0 : i32
    %c0_i32_27 = arith.constant 0 : i32
    %c0_i32_28 = arith.constant 0 : i32
    %41 = tpu.memref_slice %arg7[%0, %c0_i32_26, %c0_i32_27, %c0_i32_28] : memref<2x10x24x128xf32, #tpu.memory_space<vmem>> -> memref<1x10x24x128xf32, #tpu.memory_space<vmem>>
    %42 = tpu.memref_squeeze %41 : memref<1x10x24x128xf32, #tpu.memory_space<vmem>> -> memref<10x24x128xf32, #tpu.memory_space<vmem>>
    %c1_29 = arith.constant 1 : index
    %c0_30 = arith.constant 0 : index
    %c0_31 = arith.constant 0 : index
    %43 = vector.load %42[%c1_29, %c0_30, %c0_31] : memref<10x24x128xf32, #tpu.memory_space<vmem>>, vector<8x16x128xf32>
    %44 = vector.extract_strided_slice %14 {offsets = [3, 0], sizes = [1, 128], strides = [1, 1]} : vector<9x128xf32> to vector<1x128xf32>
    %45 = vector.shape_cast %44 : vector<1x128xf32> to vector<128xf32>
    %46 = vector.shape_cast %45 : vector<128xf32> to vector<1x1x128xf32>
    %47 = vector.broadcast %46 : vector<1x1x128xf32> to vector<8x16x128xf32>
    %48 = arith.mulf %43, %47 : vector<8x16x128xf32>
    %49 = arith.addf %40, %48 : vector<8x16x128xf32>
    %c0_i32_32 = arith.constant 0 : i32
    %c0_i32_33 = arith.constant 0 : i32
    %c0_i32_34 = arith.constant 0 : i32
    %50 = tpu.memref_slice %arg7[%0, %c0_i32_32, %c0_i32_33, %c0_i32_34] : memref<2x10x24x128xf32, #tpu.memory_space<vmem>> -> memref<1x10x24x128xf32, #tpu.memory_space<vmem>>
    %51 = tpu.memref_squeeze %50 : memref<1x10x24x128xf32, #tpu.memory_space<vmem>> -> memref<10x24x128xf32, #tpu.memory_space<vmem>>
    %c1_35 = arith.constant 1 : index
    %c1_36 = arith.constant 1 : index
    %c0_37 = arith.constant 0 : index
    %52 = vector.load %51[%c1_35, %c1_36, %c0_37] : memref<10x24x128xf32, #tpu.memory_space<vmem>>, vector<8x16x128xf32>
    %53 = vector.extract_strided_slice %14 {offsets = [4, 0], sizes = [1, 128], strides = [1, 1]} : vector<9x128xf32> to vector<1x128xf32>
    %54 = vector.shape_cast %53 : vector<1x128xf32> to vector<128xf32>
    %55 = vector.shape_cast %54 : vector<128xf32> to vector<1x1x128xf32>
    %56 = vector.broadcast %55 : vector<1x1x128xf32> to vector<8x16x128xf32>
    %57 = arith.mulf %52, %56 : vector<8x16x128xf32>
    %58 = arith.addf %49, %57 : vector<8x16x128xf32>
    %c0_i32_38 = arith.constant 0 : i32
    %c0_i32_39 = arith.constant 0 : i32
    %c0_i32_40 = arith.constant 0 : i32
    %59 = tpu.memref_slice %arg7[%0, %c0_i32_38, %c0_i32_39, %c0_i32_40] : memref<2x10x24x128xf32, #tpu.memory_space<vmem>> -> memref<1x10x24x128xf32, #tpu.memory_space<vmem>>
    %60 = tpu.memref_squeeze %59 : memref<1x10x24x128xf32, #tpu.memory_space<vmem>> -> memref<10x24x128xf32, #tpu.memory_space<vmem>>
    %c1_41 = arith.constant 1 : index
    %c2_42 = arith.constant 2 : index
    %c0_43 = arith.constant 0 : index
    %61 = vector.load %60[%c1_41, %c2_42, %c0_43] : memref<10x24x128xf32, #tpu.memory_space<vmem>>, vector<8x16x128xf32>
    %62 = vector.extract_strided_slice %14 {offsets = [5, 0], sizes = [1, 128], strides = [1, 1]} : vector<9x128xf32> to vector<1x128xf32>
    %63 = vector.shape_cast %62 : vector<1x128xf32> to vector<128xf32>
    %64 = vector.shape_cast %63 : vector<128xf32> to vector<1x1x128xf32>
    %65 = vector.broadcast %64 : vector<1x1x128xf32> to vector<8x16x128xf32>
    %66 = arith.mulf %61, %65 : vector<8x16x128xf32>
    %67 = arith.addf %58, %66 : vector<8x16x128xf32>
    %c0_i32_44 = arith.constant 0 : i32
    %c0_i32_45 = arith.constant 0 : i32
    %c0_i32_46 = arith.constant 0 : i32
    %68 = tpu.memref_slice %arg7[%0, %c0_i32_44, %c0_i32_45, %c0_i32_46] : memref<2x10x24x128xf32, #tpu.memory_space<vmem>> -> memref<1x10x24x128xf32, #tpu.memory_space<vmem>>
    %69 = tpu.memref_squeeze %68 : memref<1x10x24x128xf32, #tpu.memory_space<vmem>> -> memref<10x24x128xf32, #tpu.memory_space<vmem>>
    %c2_47 = arith.constant 2 : index
    %c0_48 = arith.constant 0 : index
    %c0_49 = arith.constant 0 : index
    %70 = vector.load %69[%c2_47, %c0_48, %c0_49] : memref<10x24x128xf32, #tpu.memory_space<vmem>>, vector<8x16x128xf32>
    %71 = vector.extract_strided_slice %14 {offsets = [6, 0], sizes = [1, 128], strides = [1, 1]} : vector<9x128xf32> to vector<1x128xf32>
    %72 = vector.shape_cast %71 : vector<1x128xf32> to vector<128xf32>
    %73 = vector.shape_cast %72 : vector<128xf32> to vector<1x1x128xf32>
    %74 = vector.broadcast %73 : vector<1x1x128xf32> to vector<8x16x128xf32>
    %75 = arith.mulf %70, %74 : vector<8x16x128xf32>
    %76 = arith.addf %67, %75 : vector<8x16x128xf32>
    %c0_i32_50 = arith.constant 0 : i32
    %c0_i32_51 = arith.constant 0 : i32
    %c0_i32_52 = arith.constant 0 : i32
    %77 = tpu.memref_slice %arg7[%0, %c0_i32_50, %c0_i32_51, %c0_i32_52] : memref<2x10x24x128xf32, #tpu.memory_space<vmem>> -> memref<1x10x24x128xf32, #tpu.memory_space<vmem>>
    %78 = tpu.memref_squeeze %77 : memref<1x10x24x128xf32, #tpu.memory_space<vmem>> -> memref<10x24x128xf32, #tpu.memory_space<vmem>>
    %c2_53 = arith.constant 2 : index
    %c1_54 = arith.constant 1 : index
    %c0_55 = arith.constant 0 : index
    %79 = vector.load %78[%c2_53, %c1_54, %c0_55] : memref<10x24x128xf32, #tpu.memory_space<vmem>>, vector<8x16x128xf32>
    %80 = vector.extract_strided_slice %14 {offsets = [7, 0], sizes = [1, 128], strides = [1, 1]} : vector<9x128xf32> to vector<1x128xf32>
    %81 = vector.shape_cast %80 : vector<1x128xf32> to vector<128xf32>
    %82 = vector.shape_cast %81 : vector<128xf32> to vector<1x1x128xf32>
    %83 = vector.broadcast %82 : vector<1x1x128xf32> to vector<8x16x128xf32>
    %84 = arith.mulf %79, %83 : vector<8x16x128xf32>
    %85 = arith.addf %76, %84 : vector<8x16x128xf32>
    %c0_i32_56 = arith.constant 0 : i32
    %c0_i32_57 = arith.constant 0 : i32
    %c0_i32_58 = arith.constant 0 : i32
    %86 = tpu.memref_slice %arg7[%0, %c0_i32_56, %c0_i32_57, %c0_i32_58] : memref<2x10x24x128xf32, #tpu.memory_space<vmem>> -> memref<1x10x24x128xf32, #tpu.memory_space<vmem>>
    %87 = tpu.memref_squeeze %86 : memref<1x10x24x128xf32, #tpu.memory_space<vmem>> -> memref<10x24x128xf32, #tpu.memory_space<vmem>>
    %c2_59 = arith.constant 2 : index
    %c2_60 = arith.constant 2 : index
    %c0_61 = arith.constant 0 : index
    %88 = vector.load %87[%c2_59, %c2_60, %c0_61] : memref<10x24x128xf32, #tpu.memory_space<vmem>>, vector<8x16x128xf32>
    %89 = vector.extract_strided_slice %14 {offsets = [8, 0], sizes = [1, 128], strides = [1, 1]} : vector<9x128xf32> to vector<1x128xf32>
    %90 = vector.shape_cast %89 : vector<1x128xf32> to vector<128xf32>
    %91 = vector.shape_cast %90 : vector<128xf32> to vector<1x1x128xf32>
    %92 = vector.broadcast %91 : vector<1x1x128xf32> to vector<8x16x128xf32>
    %93 = arith.mulf %88, %92 : vector<8x16x128xf32>
    %94 = arith.addf %85, %93 : vector<8x16x128xf32>
    %95 = vector.shape_cast %94 : vector<8x16x128xf32> to vector<128x128xf32>
    %c0_62 = arith.constant 0 : index
    %c0_63 = arith.constant 0 : index
    %96 = vector.load %arg4[%c0_62, %c0_63] : memref<128x128xf32, #tpu.memory_space<vmem>>, vector<128x128xf32>
    %cst = arith.constant dense<0.000000e+00> : vector<128x128xf32>
    %97 = tpu.matmul %95, %96, %cst {dimension_numbers = #tpu.dot_dimension_numbers<[1], [0], [0], [1], [0, 0, 1, 1], [], []>} : vector<128x128xf32>, vector<128x128xf32>, vector<128x128xf32> -> vector<128x128xf32>
    %c0_64 = arith.constant 0 : index
    %c0_65 = arith.constant 0 : index
    %98 = vector.load %arg5[%c0_64, %c0_65] : memref<1x128xf32, #tpu.memory_space<vmem>>, vector<1x128xf32>
    %99 = vector.shape_cast %98 : vector<1x128xf32> to vector<128xf32>
    %100 = vector.shape_cast %99 : vector<128xf32> to vector<1x128xf32>
    %101 = vector.broadcast %100 : vector<1x128xf32> to vector<128x128xf32>
    %102 = arith.addf %97, %101 : vector<128x128xf32>
    %103 = vector.shape_cast %102 : vector<128x128xf32> to vector<8x16x128xf32>
    %c0_66 = arith.constant 0 : index
    %c0_67 = arith.constant 0 : index
    %c0_68 = arith.constant 0 : index
    %c0_69 = arith.constant 0 : index
    %104 = vector.load %arg6[%c0_66, %c0_67, %c0_68, %c0_69] : memref<1x8x16x128xf32, #tpu.memory_space<vmem>>, vector<1x8x16x128xf32>
    %105 = vector.shape_cast %104 : vector<1x8x16x128xf32> to vector<8x16x128xf32>
    %106 = vector.shape_cast %103 : vector<8x16x128xf32> to vector<1x8x16x128xf32>
    tpu.vector_store %arg6[%c0_66, %c0_67, %c0_68, %c0_69], %106 {strides = array<i32>} : memref<1x8x16x128xf32, #tpu.memory_space<vmem>>, vector<1x8x16x128xf32>,
    return
  }
  func.func @transform_1(%arg0: i32, %arg1: i32) -> (i32, i32) {
    %c0_i32 = arith.constant 0 : i32
    %c0_i32_0 = arith.constant 0 : i32
    %c0_i32_1 = arith.constant 0 : i32
    return %c0_i32, %c0_i32_0 : i32, i32
  }
  func.func @transform_2(%arg0: i32, %arg1: i32) -> (i32, i32) {
    %c0_i32 = arith.constant 0 : i32
    %c0_i32_0 = arith.constant 0 : i32
    %c0_i32_1 = arith.constant 0 : i32
    return %c0_i32, %c0_i32_0 : i32, i32
  }
  func.func @transform_3(%arg0: i32, %arg1: i32) -> (i32, i32) {
    %c0_i32 = arith.constant 0 : i32
    %c0_i32_0 = arith.constant 0 : i32
    %c0_i32_1 = arith.constant 0 : i32
    return %c0_i32, %c0_i32_0 : i32, i32
  }
  func.func @transform_4(%arg0: i32, %arg1: i32) -> (i32, i32, i32, i32) {
    %c0_i32 = arith.constant 0 : i32
    %c0_i32_0 = arith.constant 0 : i32
    %c0_i32_1 = arith.constant 0 : i32
    return %arg0, %arg1, %c0_i32, %c0_i32_0 : i32, i32, i32, i32
  }
}

</mosaic_0001>

<bundles_post_ra>
// kernel: tpu_custom_call.1
= control target key start
LH: loop header
LB: loop body
LE: loop exit
PB: predicated region body
PF: predicated region fallthrough
CT: control target
= control target key end

     0   :  { %s2122_s0 = inlined_call_operand.hbm [shape: f32[2,18,24,128], index: 0, kind: input, shape index: {}]   ;;  %s2123_s1 = inlined_call_operand.hbm [shape: f32[9,128], index: 1, kind: input, shape index: {}]   ;;  %s2124_s2 = inlined_call_operand.hbm [shape: f32[128,128], index: 2, kind: input, shape index: {}]   ;;  %s2125_s3 = inlined_call_operand.vmem [shape: f32[1,128], index: 3, kind: input, shape index: {}]   ;;  %s2126_s4 = inlined_call_operand.hbm [shape: f32[2,16,16,128], index: 4, kind: output, shape index: {}]  }
   0x1   :  { %2160 = sst [smem:[#allocation43_spill]] %s2123_s1 }
   0x2   :  { %2161 = sst [smem:[#allocation44_spill]] %s2124_s2 }
   0x3   :  { %9 = vsyncpa [#allocation5], 0 }
   0x4   :  { %10 = vsyncpa [#allocation8], 0 }
   0x5   :  { %11 = vsyncpa [#allocation6], 0 }
   0x6   :  { %13 = vsyncpa [#allocation6 + $0x1], 0  ;;  %s1444_s15 = smov 0   ;;  %s1446_s16 = smov 0  }
   0x7   :  { %s1448_s17 = smov 0   ;;  %s1450_s18 = smov 0  }
   0x8   :  { %s1452_s19 = smov 0   ;;  %s1454_s20 = smov 0  }
   0x9   :  { %s1456_s21 = smov 0   ;;  %s1458_s22 = smov 0  }
   0xa LB: > { %2162 = sst [smem:[#allocation20_spill]] %s1406_s21  ;;  %s919_s23 = sadd.s32 4294967295, %s1410_s22   ;;  %s1410_s22 = sphi %s1458_s22, %s19_s22   ;;  %s1406_s21 = sphi %s1456_s21, %s2217_s21   ;;  %s1402_s20 = sphi %s1454_s20, %s2222_s20   ;;  %s1398_s19 = sphi %s1452_s19, %s2215_s19   ;;  %s1394_s18 = sphi %s1450_s18, %s2221_s18   ;;  %s1390_s17 = sphi %s1448_s17, %s2220_s17   ;;  %s1386_s16 = sphi %s1446_s16, %s2219_s16   ;;  %s1382_s15 = sphi %s1444_s15, %s2218_s15  }
   0xb   : > { %s920_s24 = sadd.s32 4294967294, %s1410_s22   ;;  %s28_s25 = sadd.s32 1, %s1402_s20 }
   0xc   : > { %s31_s26 = sadd.s32 1, %s1406_s21  ;;  %p29_p0 = scmp.ge.s32.totalorder %s28_s25, 2 }
   0xd   : > { %s103_s27 = sadd.s32 1, %s1390_s17  ;;  %p113_p1 = scmp.ne.s32.totalorder %s1390_s17, %s1386_s16 }
   0xe   : > { %p114_p2 = scmp.eq.s32.totalorder %s919_s23, 3  ;;  %s2224_s25 = smov (%p29_p0, %s28_s25), 0 }
   0xf   : > { %2163 = sst [smem:[#allocation21_spill]] %s2224_s25  ;;  %s2226_s26 = smov (!%p29_p0, %s31_s26), %s1406_s21 }
  0x10   : > { %s99_s28 = ssub.s32 %s1402_s20, %s2224_s25  ;;  %p1496_p3 = por %p114_p2, %p113_p1 }
  0x11   : > { %p33_p4 = scmp.ge.s32.totalorder %s2226_s26, 2  ;;  %p119_p5 = scmp.ne.s32.totalorder %s1386_s16, %s1382_s15 }
  0x12   : > { %p120_p6 = scmp.eq.s32.totalorder %s920_s24, 3  ;;  %p921_p7 = scmp.ge.s32.totalorder %s1410_s22, 1 }
  0x13   : > { %s2228_s26 = smov (%p33_p4, %s2226_s26), 0  ;;  %p127_p9 = scmp.lt.s32.totalorder %s1410_s22, 5 }
  0x14   : > { %2165 = sst [smem:[#allocation22_spill]] %s2228_s26  ;;  %p1505_p8 = por %p120_p6, %p119_p5 }
  0x15   : > { %s98_s5 = ssub.s32 %s1406_s21, %s2228_s26  ;;  %p1512_p10 = pnand %p921_p7, %p127_p9 }
  0x16   : > { %s100_s6 = sor.u32 %s99_s28, %s98_s5  ;;  %p1516_p12 = scmp.eq.s32.totalorder %s919_s23, 0 }
  0x17   : > { %p101_p11 = scmp.eq.s32.totalorder %s100_s6, 0  ;;  %p1099_p13 = pneg %p1512_p10 }
  0x18   : > { %s2169_s1 = sld [smem:[#allocation43_spill]]  ;;  %s1412_s13 = smov [#allocation4]  }
  0x19   : > { %s1526_s12 = scalar_select %p101_p11, %s1390_s17, %s103_s27  }
  0x1a   : > { %s140_s14 = sshll.u32 %s1412_s13, 4  ;;  %p1100_p0 = pnand %p1516_p12, %p1099_p13  ;;  %s141_s14 = int_to_ptr.vmem [resolvable:$true] %s140_s14 }
  0x1b   : > { %s1413_s24 = smov 128   ;;  %s1414_s23 = smov 8  }
  0x1c   : > { %s2170_s2 = sld [smem:[#allocation44_spill]]  ;;  %s1415_s26 = smov [#allocation7]  }
  0x1d   : > { %s154_s25 = sshll.u32 %s1415_s26, 4  ;;  %s155_s25 = int_to_ptr.vmem [resolvable:$true] %s154_s25 }
  0x1e   : > { %s138_s11 = sshll.u32 %s2169_s1, 4  ;;  %s139_s11 = int_to_ptr.hbm [resolvable:$true] %s138_s11 }
  0x1f   : > { %1102 = dma.hbm_to_vmem [thread:$0]  (!%p1100_p0), %s139_s11, 256, %s141_s14, [#allocation5], %s1413_s24, %s1413_s24, %s1414_s23  }
  0x20   : > { %173 = sbr.rel (%p1512_p10) target bundleno = 314 (0x13a), region = 32 }
  0x22   : > { %s152_s6 = sshll.u32 %s2170_s2, 4  ;;  %s153_s6 = int_to_ptr.hbm [resolvable:$true] %s152_s6 }
  0x23   : > { %1105 = dma.hbm_to_vmem [thread:$0]  (!%p1100_p0), %s153_s6, 2048, %s155_s25, [#allocation8], %s1413_s24, %s1413_s24, %s1414_s23  }
  0x25   : > { %1367 = dma.done.wait (%p1516_p12), [#allocation5], 256  }
  0x26   : > { %1369 = vsyncadd (%p1516_p12), [#allocation5], 4294967040 }
  0x27   : > { %1371 = dma.done.wait (%p1516_p12), [#allocation8], 2048  }
  0x28   : > { %1373 = vsyncadd (%p1516_p12), [#allocation8], 4294965248  ;;  %s2129_s25 = sand.u32 1, %s1386_s16   ;;  %p1114_p1 = scmp.eq.s32.totalorder %s1394_s18, 0 }
  0x29   : > { %s1546_s26 = sshll.u32 %s2129_s25, 7  ;;  %s209_s27 = smul.u32 432, %s1398_s19 }
  0x2a   : > { %s853_s7 = smul.u32 192, %s1394_s18  ;;  %s2130_s13 = smov [#allocation2]  }
  0x2b   : > { %s210_s11 = scalar_lea.hbm %s2122_s0, %s209_s27  ;;  %s220_s8 = sshll.u32 %s2130_s13, 4  ;;  %s221_s8 = int_to_ptr.vmem [resolvable:$true] %s220_s8 }
  0x2c   : > { %s218_s14 = sshll.u32 %s210_s11, 4  ;;  %s855_s24 = sadd.s32 %s853_s7, %s209_s27  ;;  %s219_s14 = int_to_ptr.hbm [resolvable:$true] %s218_s14 }
  0x2d   : > { %s1250_s23 = sshra.s32 %s219_s14, 4  ;;  %s2131_s25 = scalar_lea.hbm %s2122_s0, 864  ;;  %s1251_s23 = int_to_ptr.hbm [resolvable:$true] %s1250_s23 }
  0x2e   : > { %s1252_s28 = scalar_lea.hbm %s1251_s23, 240  ;;  %p1257_p6 = scmp.lt.s32.totalorder %s1251_s23, %s2122_s0 }
  0x2f   : > { %p1253_p2 = scmp.ne.s32.totalorder %s1251_s23, %s1252_s28  ;;  %p1258_p7 = scmp.lt.s32.totalorder %s2131_s25, %s1252_s28 }
  0x31   : > { %p1254_p4 = pnand %p1253_p2, %p1114_p1  ;;  %p1259_p9 = por %p1258_p7, %p1257_p6 }
  0x33   : > { %p1255_p5 = pneg %p1254_p4 }
  0x35   : > { %p1260_p10 = pnand %p1259_p9, %p1255_p5 }
  0x37   : > { %1263 = shalt.err (!%p1260_p10)  }
  0x38   : > { %1094 = dma.hbm_to_vmem [thread:$0]  (%p1114_p1), %s219_s14, 3840, %s221_s8, [#allocation3] }
  0x39   : > { %s856_s5 = scalar_lea.hbm %s2122_s0, %s855_s24  ;;  %p199_p11 = scmp.lt.s32.totalorder %s1394_s18, 0 }
  0x3a   : > { %s857_s23 = scalar_lea.hbm %s856_s5, 192  ;;  %s200_s6 = ssub.s32 0, %s1394_s18 }
  0x3b   : > { %s928_s13 = smin.u32 %s1394_s18, %s200_s6  ;;  %s224_s9 = sadd.s32 1, %s1394_s18 }
  0x3c   : > { %s202_s28 = sand.u32 1, %s928_s13   ;;  %s245_s11 = sshll.u32 %s857_s23, 4  ;;  %s246_s11 = int_to_ptr.hbm [resolvable:$true] %s245_s11 }
  0x3d   : > { %s203_s10 = ssub.s32 0, %s202_s28  ;;  %p1578_p12 = scmp.lt.s32.totalorder %s224_s9, 2 }
  0x3e   : > { %s2230_s10 = smov (!%p199_p11, %s203_s10), %s202_s28  ;;  %s1278_s6 = sshra.s32 %s246_s11, 4  ;;  %s1279_s6 = int_to_ptr.hbm [resolvable:$true] %s1278_s6 }
  0x3f   : > { %s229_s8 = ssub.s32 1, %s2230_s10  ;;  %s251_s24 = smul.u32 240, %s2230_s10 }
  0x40   : > { %s235_s14 = smul.u32 240, %s229_s8  ;;  %s237_s5 = scalar_lea.sflag [#allocation3], %s229_s8 }
  0x41   : > { %s1280_s13 = scalar_lea.hbm %s1279_s6, 240  ;;  %p1285_p2 = scmp.lt.s32.totalorder %s1279_s6, %s2122_s0 }
  0x42   : > { %s236_s27 = scalar_lea.vmem [#allocation2], %s235_s14  ;;  %p1281_p13 = scmp.ne.s32.totalorder %s1279_s6, %s1280_s13 }
  0x43   : > { %s247_s7 = sshll.u32 %s236_s27, 4  ;;  %s2172_s2 = scalar_lea.hbm %s2122_s0, 864  ;;  %s248_s7 = int_to_ptr.vmem [resolvable:$true] %s247_s7 }
  0x44   : > { %p1282_p0 = pnand %p1281_p13, %p1578_p12  ;;  %p1286_p4 = scmp.lt.s32.totalorder %s2172_s2, %s1280_s13 }
  0x46   : > { %p1283_p1 = pneg %p1282_p0  ;;  %p1287_p5 = por %p1286_p4, %p1285_p2 }
  0x48   : > { %p1288_p6 = pnand %p1287_p5, %p1283_p1 }
  0x4a   : > { %1291 = shalt.err (!%p1288_p6)  }
  0x4b   : > { %s1292_s8 = sshra.s32 %s248_s7, 4  ;;  %s2173_s27 = smov [#allocation2]   ;;  %s1293_s8 = int_to_ptr.vmem [resolvable:$true] %s1292_s8 }
  0x4c   : > { %s1294_s14 = scalar_lea.vmem %s1293_s8, 240  ;;  %s1298_s21 = scalar_lea.vmem %s2173_s27, 480 }
  0x4d   : > { %p1295_p7 = scmp.ne.s32.totalorder %s1293_s8, %s1294_s14  ;;  %p1300_p11 = scmp.lt.s32.totalorder %s1298_s21, %s1294_s14 }
  0x4f   : > { %p1296_p9 = pnand %p1295_p7, %p1578_p12 }
  0x51   : > { %p1297_p10 = pneg %p1296_p9 }
  0x53   : > { %p1302_p13 = pnand %p1300_p11, %p1297_p10 }
  0x55   : > { %1305 = shalt.err (!%p1302_p13)  }
  0x56   : > { %1096 = dma.hbm_to_vmem [thread:$0]  (%p1578_p12), %s246_s11, 3840, %s248_s7, %s237_s5 }
  0x57   : > { %s1599_s1 = scalar_lea.vmem [#allocation9], %s1546_s26  ;;  %s1601_s2 = scalar_lea.vmem [#allocation2], %s251_s24 }
  0x58   : > { %s253_s6 = scalar_lea.sflag [#allocation3], %s2230_s10 }
  0x59   : > { %1374 = dma.done.wait %s253_s6, 3840 }
  0x5a   : > { %1375 = vsyncadd %s253_s6, 4294963456  ;;  %v702_v0 = vld [vmem:[#allocation7 + $0x78] sm:$0xff]  ;;  %v701_v1 = vld [vmem:[#allocation7 + $0x70] sm:$0xff]  ;;  %s1036_s26 = sshll.u32 %s1394_s18, 4  ;;  %s1030_s10 = sshll.u32 %s1398_s19, 5 }
  0x5b   : > { %1038 = vmatpush.msra.mxu2 %v702_v0  ;;  %1039 = vmatpush.msra.mxu3 %v702_v0  ;;  %v700_v2 = vld [vmem:[#allocation7 + $0x68] sm:$0xff]  ;;  %v699_v3 = vld [vmem:[#allocation7 + $0x60] sm:$0xff]  ;;  %v698_v4 = vld [vmem:[#allocation7 + $0x58] sm:$0xff]  ;;  %s801_s11 = sadd.s32 %s1036_s26, %s1030_s10  ;;  %s804_s23 = sshll.u32 %s1599_s1, 4  ;;  %s805_s23 = int_to_ptr.vmem [resolvable:$true] %s804_s23 }
  0x5c   : > { %707 = vmatpush.msra.mxu0 %v702_v0  ;;  %1037 = vmatpush.msra.mxu1 %v702_v0  ;;  %v258_v5 = vld [vmem:[#allocation4] sm:$0xff]  ;;  %v1620_v13 = vld [vmem:[%s1601_s2 + $0x78] sm:$0xff]  ;;  %v1660_v32 = vld [vmem:[%s1601_s2 + $0xa8] sm:$0xff]  ;;  %s1031_s24 = sshll.u32 %s801_s11, 3  ;;  %s2214_s18 = sand.u32 1, %s1386_s16  }
  0x5d   : > { %1041 = vmatpush.msra.mxu2 %v701_v1  ;;  %1042 = vmatpush.msra.mxu3 %v701_v1  ;;  %v1605_v6 = vld [vmem:[%s1601_s2 + $0x60] sm:$0xff]  ;;  %v1607_v7 = vperm.slane %v258_v5, 0  ;;  %v1612_v9 = vperm.slane %v258_v5, 1  ;;  %v1617_v11 = vperm.slane %v258_v5, 2  ;;  %v1622_v14 = vperm.slane %v258_v5, 3  ;;  %v1641_v22 = vld [vmem:[%s1601_s2 + $0x90] sm:$0xff]  ;;  %s803_s13 = scalar_lea.hbm %s2126_s4, %s1031_s24 }
  0x5e   : > { %708 = vmatpush.msra.mxu0 %v701_v1  ;;  %1040 = vmatpush.msra.mxu1 %v701_v1  ;;  %2174 = vst [vmem:[#allocation23_spill] sm:$0xff] %v1605_v6  ;;  %v1610_v8 = vld [vmem:[%s1601_s2 + $0x61] sm:$0xff]  ;;  %v1625_v15 = vld [vmem:[%s1601_s2 + $0x79] sm:$0xff]  ;;  %v1627_v16 = vperm.slane %v258_v5, 4  ;;  %v1629_v17 = vperm.slane %v258_v5, 5  ;;  %v1643_v23 = vperm.slane %v258_v5, 6 }
  0x5f   : > { %1044 = vmatpush.msra.mxu2 %v700_v2  ;;  %1045 = vmatpush.msra.mxu3 %v700_v2  ;;  %2175 = vst [vmem:[#allocation24_spill] sm:$0xff] %v1610_v8  ;;  %v1615_v10 = vld [vmem:[%s1601_s2 + $0x62] sm:$0xff]  ;;  %v285_v18 = vmul.f32 %v1607_v7, %v1605_v6  ;;  %v318_v19 = vmul.f32 %v1612_v9, %v1610_v8  ;;  %v1638_v21 = vld [vmem:[%s1601_s2 + $0x7a] sm:$0xff]  ;;  %v1646_v24 = vld [vmem:[%s1601_s2 + $0x91] sm:$0xff]  ;;  %v1648_v25 = vperm.slane %v258_v5, 7  ;;  %s806_s9 = sshll.u32 %s803_s13, 4  ;;  %s807_s9 = int_to_ptr.hbm [resolvable:$true] %s806_s9 }
  0x60   : > { %709 = vmatpush.msra.mxu0 %v700_v2  ;;  %1043 = vmatpush.msra.mxu1 %v700_v2  ;;  %2176 = vst [vmem:[#allocation25_spill] sm:$0xff] %v1615_v10  ;;  %v697_v12 = vld [vmem:[#allocation7 + $0x50] sm:$0xff]  ;;  %v367_v20 = vmul.f32 %v1617_v11, %v1615_v10  ;;  %v696_v27 = vld [vmem:[#allocation7 + $0x48] sm:$0xff]  ;;  %v417_v29 = vmul.f32 %v1620_v13, %v1622_v14  ;;  %v1655_v30 = vld [vmem:[#allocation4 + $0x8] ss:$0 sm:$0xff]  ;;  %s789_s19 = scalar_lea.sflag [#allocation6], %s2214_s18 }
  0x61   : > { %1047 = vmatpush.msra.mxu2 %v699_v3  ;;  %1048 = vmatpush.msra.mxu3 %v699_v3  ;;  %v1651_v26 = vld [vmem:[%s1601_s2 + $0x92] sm:$0xff]  ;;  %v334_v28 = vadd.f32 %v318_v19, %v285_v18  ;;  %v289_v31 = vmul.f32 %v1641_v22, %v1607_v7  ;;  %v466_v33 = vmul.f32 %v1625_v15, %v1627_v16  ;;  %v1669_v36 = vld [vmem:[%s1601_s2 + $0xa9] sm:$0xff]  ;;  %v260_v42 = vld [vmem:[%s1601_s2] sm:$0xff]  ;;  %s1320_s28 = sshra.s32 %s807_s9, 4  ;;  %s1321_s28 = int_to_ptr.hbm [resolvable:$true] %s1320_s28 }
  0x62   : > { %710 = vmatpush.msra.mxu0 %v699_v3  ;;  %1046 = vmatpush.msra.mxu1 %v699_v3  ;;  %v515_v34 = vmul.f32 %v1638_v21, %v1629_v17  ;;  %v322_v35 = vmul.f32 %v1646_v24, %v1612_v9  ;;  %v695_v37 = vld [vmem:[#allocation7 + $0x40] sm:$0xff]  ;;  %v565_v39 = vmul.f32 %v1641_v22, %v1643_v23  ;;  %v694_v48 = vld [vmem:[#allocation7 + $0x38] sm:$0xff]  ;;  %v693_v58 = vld [vmem:[#allocation7 + $0x30] sm:$0xff]  ;;  %s1322_s8 = scalar_lea.hbm %s1321_s28, 128  ;;  %p1327_p2 = scmp.lt.s32.totalorder %s1321_s28, %s2126_s4 }
  0x63   : > { %1050 = vmatpush.msra.mxu2 %v698_v4  ;;  %1051 = vmatpush.msra.mxu3 %v698_v4  ;;  %v383_v38 = vadd.f32 %v367_v20, %v334_v28  ;;  %v371_v40 = vmul.f32 %v1651_v26, %v1617_v11  ;;  %v1676_v41 = vld [vmem:[%s1601_s2 + $0xaa] sm:$0xff]  ;;  %v614_v43 = vmul.f32 %v1646_v24, %v1648_v25  ;;  %v293_v46 = vld [vmem:[%s1601_s2 + $0x1] sm:$0xff]  ;;  %v1701_v57 = vld [vmem:[%s1601_s2 + $0x18] sm:$0xff]  ;;  %p1323_p12 = scmp.ne.s32.totalorder %s1321_s28, %s1322_s8 }
  0x64   : > { %711 = vmatpush.msra.mxu0 %v698_v4  ;;  %1049 = vmatpush.msra.mxu1 %v698_v4  ;;  %v338_v44 = vadd.f32 %v322_v35, %v289_v31  ;;  %v421_v45 = vmul.f32 %v1660_v32, %v1622_v14  ;;  %v342_v47 = vld [vmem:[%s1601_s2 + $0x2] sm:$0xff]  ;;  %v1687_v50 = vmul.f32 %v1655_v30, %v1651_v26  ;;  %v1709_v63 = vld [vmem:[%s1601_s2 + $0x19] sm:$0xff]  ;;  %v1721_v19 = vld [vmem:[%s1601_s2 + $0x30] sm:$0xff] }
  0x65   : > { %1053 = vmatpush.msra.mxu2 %v697_v12  ;;  %1054 = vmatpush.msra.mxu3 %v697_v12  ;;  %v433_v49 = vadd.f32 %v417_v29, %v383_v38  ;;  %v470_v51 = vmul.f32 %v1669_v36, %v1627_v16  ;;  %v1692_v52 = vld [vmem:[%s1601_s2 + $0xc0] sm:$0xff]  ;;  %v519_v55 = vmul.f32 %v1676_v41, %v1629_v17  ;;  %v692_v4 = vld [vmem:[#allocation7 + $0x28] sm:$0xff]  ;;  %p1324_p0 = pnand %p1323_p12, %p1496_p3 }
  0x66   : > { %712 = vmatpush.msra.mxu0 %v697_v12  ;;  %1052 = vmatpush.msra.mxu1 %v697_v12  ;;  %v1695_v53 = vld [vmem:[%s1601_s2 + $0xc1] sm:$0xff]  ;;  %v387_v54 = vadd.f32 %v371_v40, %v338_v44  ;;  %v277_v56 = vmul.f32 %v1607_v7, %v260_v42  ;;  %v310_v61 = vmul.f32 %v1612_v9, %v293_v46  ;;  %v1724_v20 = vld [vmem:[%s1601_s2 + $0x31] sm:$0xff] }
  0x67   : > { %1056 = vmatpush.msra.mxu2 %v696_v27  ;;  %1057 = vmatpush.msra.mxu3 %v696_v27  ;;  %v482_v59 = vadd.f32 %v466_v33, %v433_v49  ;;  %v1704_v60 = vld [vmem:[%s1601_s2 + $0xc2] sm:$0xff]  ;;  %v359_v62 = vmul.f32 %v1617_v11, %v342_v47  ;;  %v569_v1 = vmul.f32 %v1692_v52, %v1643_v23  ;;  %v1716_v3 = vld [vmem:[%s1601_s2 + $0x1a] sm:$0xff]  ;;  %v1731_v31 = vld [vmem:[%s1601_s2 + $0x32] sm:$0xff]  ;;  %p1325_p1 = pneg %p1324_p0 }
  0x68   : > { %713 = vmatpush.msra.mxu0 %v696_v27  ;;  %1055 = vmatpush.msra.mxu1 %v696_v27  ;;  %v437_v0 = vadd.f32 %v421_v45, %v387_v54  ;;  %v618_v2 = vmul.f32 %v1695_v53, %v1648_v25  ;;  %v326_v12 = vadd.f32 %v310_v61, %v277_v56  ;;  %v691_v33 = vld [vmem:[#allocation7 + $0x20] sm:$0xff]  ;;  %v1736_v38 = vld [vmem:[%s1601_s2 + $0x48] sm:$0xff] }
  0x69   : > { %1059 = vmatpush.msra.mxu2 %v695_v37  ;;  %1060 = vmatpush.msra.mxu3 %v695_v37  ;;  %v531_v5 = vadd.f32 %v515_v34, %v482_v59  ;;  %v409_v18 = vmul.f32 %v1701_v57, %v1622_v14  ;;  %v667_v28 = vmul.f32 %v1655_v30, %v1704_v60  ;;  %v690_v45 = vld [vmem:[#allocation7 + $0x18] sm:$0xff] }
  0x6a   : > { %714 = vmatpush.msra.mxu0 %v695_v37  ;;  %1058 = vmatpush.msra.mxu1 %v695_v37  ;;  %v486_v27 = vadd.f32 %v470_v51, %v437_v0  ;;  %v458_v29 = vmul.f32 %v1709_v63, %v1627_v16  ;;  %2177 = vst [vmem:[#allocation26_spill] sm:$0xff] %v1731_v31  ;;  %v1754_v59 = vld [vmem:[%s1601_s2 + $0x4a] sm:$0xff] }
  0x6b   : > { %1062 = vmatpush.msra.mxu2 %v694_v48  ;;  %1063 = vmatpush.msra.mxu3 %v694_v48  ;;  %v581_v34 = vadd.f32 %v565_v39, %v531_v5  ;;  %v375_v35 = vadd.f32 %v359_v62, %v326_v12  ;;  %v507_v37 = vmul.f32 %v1716_v3, %v1629_v17  ;;  %v688_v5 = vld [vmem:[#allocation7 + $0x8] sm:$0xff] }
  0x6c   : > { %715 = vmatpush.msra.mxu0 %v694_v48  ;;  %1061 = vmatpush.msra.mxu1 %v694_v48  ;;  %v535_v40 = vadd.f32 %v519_v55, %v486_v27  ;;  %v281_v42 = vmul.f32 %v1721_v19, %v1607_v7  ;;  %v314_v44 = vmul.f32 %v1724_v20, %v1612_v9  ;;  %v1745_v48 = vld [vmem:[%s1601_s2 + $0x49] sm:$0xff] }
  0x6d   : > { %1065 = vmatpush.msra.mxu2 %v693_v58  ;;  %1066 = vmatpush.msra.mxu3 %v693_v58  ;;  %v630_v39 = vadd.f32 %v614_v43, %v581_v34  ;;  %v425_v46 = vadd.f32 %v409_v18, %v375_v35  ;;  %v363_v47 = vmul.f32 %v1731_v31, %v1617_v11  ;;  %v689_v55 = vld [vmem:[#allocation7 + $0x10] sm:$0xff] }
  0x6e   : > { %716 = vmatpush.msra.mxu0 %v693_v58  ;;  %1064 = vmatpush.msra.mxu1 %v693_v58  ;;  %v585_v49 = vadd.f32 %v569_v1, %v535_v40  ;;  %v330_v51 = vadd.f32 %v314_v44, %v281_v42  ;;  %v413_v54 = vmul.f32 %v1736_v38, %v1622_v14  ;;  %v1759_v1 = vld [vmem:[%s1601_s2 + $0x68] sm:$0xff]  ;;  %v1773_v35 = vld [vmem:[%s1601_s2 + $0x80] sm:$0xff] }
  0x6f   : > { %1068 = vmatpush.msra.mxu2 %v692_v4  ;;  %1069 = vmatpush.msra.mxu3 %v692_v4  ;;  %v474_v56 = vadd.f32 %v458_v29, %v425_v46  ;;  %v557_v43 = vmul.f32 %v1721_v19, %v1643_v23  ;;  %v606_v58 = vmul.f32 %v1724_v20, %v1648_v25  ;;  %v1768_v29 = vld [vmem:[%s1601_s2 + $0x6a] sm:$0xff] }
  0x70   : > { %717 = vmatpush.msra.mxu0 %v692_v4  ;;  %1067 = vmatpush.msra.mxu1 %v692_v4  ;;  %v634_v61 = vadd.f32 %v618_v2, %v585_v49  ;;  %v379_v62 = vadd.f32 %v363_v47, %v330_v51  ;;  %v462_v0 = vmul.f32 %v1745_v48, %v1627_v16  ;;  %v1762_v4 = vld [vmem:[%s1601_s2 + $0x69] sm:$0xff]  ;;  %v1789_v51 = vld [vmem:[%s1601_s2 + $0x98] sm:$0xff] }
  0x71   : > { %1071 = vmatpush.msra.mxu2 %v691_v33  ;;  %1072 = vmatpush.msra.mxu3 %v691_v33  ;;  %v679_v12 = vadd.f32 %v1687_v50, %v630_v39  ;;  %v523_v18 = vadd.f32 %v507_v37, %v474_v56  ;;  %v655_v27 = vmul.f32 %v1655_v30, %v1731_v31  ;;  %v687_v40 = vld [vmem:[#allocation7] sm:$0xff] }
  0x72   : > { %718 = vmatpush.msra.mxu0 %v691_v33  ;;  %1070 = vmatpush.msra.mxu1 %v691_v33  ;;  %v683_v2 = vadd.f32 %v667_v28, %v634_v61  ;;  %v429_v33 = vadd.f32 %v413_v54, %v379_v62  ;;  %v511_v34 = vmul.f32 %v1754_v59, %v1629_v17  ;;  %v1784_v39 = vld [vmem:[%s1601_s2 + $0x81] sm:$0xff] }
  0x73   : > { %1074 = vmatpush.msra.mxu2 %v690_v45  ;;  %1075 = vmatpush.msra.mxu3 %v690_v45  ;;  %2178 = vst [vmem:[#allocation27_spill] sm:$0xff] %v1773_v35  ;;  %v573_v50 = vadd.f32 %v557_v43, %v523_v18  ;;  %v286_v37 = vmul.f32 %v1607_v7, %v1759_v1  ;;  %v1794_v56 = vld [vmem:[%s1601_s2 + $0x82] sm:$0xff]  ;;  %v1797_v43 = vld [vmem:[%s1601_s2 + $0x99] sm:$0xff] }
  0x74   : > { %719 = vmatpush.msra.mxu0 %v690_v45  ;;  %1073 = vmatpush.msra.mxu1 %v690_v45  ;;  %v319_v42 = vmul.f32 %v1612_v9, %v1762_v4  ;;  %v478_v28 = vadd.f32 %v462_v0, %v429_v33  ;;  %v561_v44 = vmul.f32 %v1643_v23, %v1605_v6  ;;  %v1800_v61 = vld [vmem:[%s1601_s2 + $0x9a] sm:$0xff]  ;;  %v1809_v33 = vld [vmem:[%s1601_s2 + $0xb0] sm:$0xff] }
  0x75   : > { %1077 = vmatpush.msra.mxu2 %v689_v55  ;;  %1078 = vmatpush.msra.mxu3 %v689_v55  ;;  %v368_v45 = vmul.f32 %v1617_v11, %v1768_v29  ;;  %2179 = vst [vmem:[#allocation28_spill] sm:$0xff] %v1784_v39  ;;  %v622_v46 = vadd.f32 %v606_v58, %v573_v50  ;;  %v261_v50 = vld [vmem:[%s1601_s2 + $0x8] sm:$0xff] }
  0x76   : > { %720 = vmatpush.msra.mxu0 %v689_v55  ;;  %1076 = vmatpush.msra.mxu1 %v689_v55  ;;  %v335_v47 = vadd.f32 %v319_v42, %v286_v37  ;;  %v418_v49 = vmul.f32 %v1773_v35, %v1622_v14  ;;  %2180 = vst [vmem:[#allocation29_spill] sm:$0xff] %v1789_v51  ;;  %v294_v37 = vld [vmem:[%s1601_s2 + $0x9] sm:$0xff] }
  0x77   : > { %1080 = vmatpush.msra.mxu2 %v688_v5  ;;  %1081 = vmatpush.msra.mxu3 %v688_v5  ;;  %v527_v54 = vadd.f32 %v511_v34, %v478_v28  ;;  %v610_v55 = vmul.f32 %v1648_v25, %v1610_v8  ;;  %2181 = vst [vmem:[#allocation30_spill] sm:$0xff] %v1794_v56  ;;  %v343_v42 = vld [vmem:[%s1601_s2 + $0xa] sm:$0xff]  ;;  %v1899_v8 = vld [vmem:[%s1601_s2 + $0x52] sm:$0xff] }
  0x78   : > { %721 = vmatpush.msra.mxu0 %v688_v5  ;;  %1079 = vmatpush.msra.mxu1 %v688_v5  ;;  %2182 = vst [vmem:[#allocation31_spill] sm:$0xff] %v1797_v43  ;;  %v671_v58 = vadd.f32 %v655_v27, %v622_v46  ;;  %v384_v62 = vadd.f32 %v368_v45, %v335_v47  ;;  %v1825_v46 = vld [vmem:[%s1601_s2 + $0xb1] sm:$0xff] }
  0x79   : > { %1083 = vmatpush.msra.mxu2 %v687_v40  ;;  %1084 = vmatpush.msra.mxu3 %v687_v40  ;;  %2183 = vst [vmem:[#allocation32_spill] sm:$0xff] %v1800_v61  ;;  %v467_v0 = vmul.f32 %v1784_v39, %v1627_v16  ;;  %v577_v5 = vadd.f32 %v561_v44, %v527_v54  ;;  %v1828_v47 = vld [vmem:[%s1601_s2 + $0xb2] sm:$0xff] }
  0x7a   : > { %747 = vmatmul.f32.vlgmr.msra.gmra.mxu2 %v679_v12  ;;  %759 = vmatmul.f32.vlgmr.msra.gmra.mxu3 %v683_v2  ;;  %v659_v18 = vmul.f32 %v1655_v30, %v1615_v10  ;;  %v290_v12 = vmul.f32 %v1789_v51, %v1607_v7  ;;  %2184 = vst [vmem:[#allocation33_spill] sm:$0xff] %v1809_v33  ;;  %v1860_v39 = vld [vmem:[%s1601_s2 + $0x39] sm:$0xff]  ;;  %v1879_v35 = vld [vmem:[%s1601_s2 + $0x50] sm:$0xff] }
  0x7b   : > { %722 = vmatpush.msra.mxu0 %v687_v40  ;;  %1082 = vmatpush.msra.mxu1 %v687_v40  ;;  %v434_v27 = vadd.f32 %v418_v49, %v384_v62  ;;  %v516_v2 = vmul.f32 %v1794_v56, %v1629_v17  ;;  %v323_v34 = vmul.f32 %v1797_v43, %v1612_v9  ;;  %v1835_v62 = vld [vmem:[%s1601_s2 + $0xc8] sm:$0xff] }
  0x7c   : > { %723 = vmatmul.f32.vlgmr.msra.gmra.mxu0 %v671_v58  ;;  %v372_v40 = vmul.f32 %v1800_v61, %v1617_v11  ;;  %v626_v28 = vadd.f32 %v610_v55, %v577_v5  ;;  %v566_v44 = vmul.f32 %v1789_v51, %v1643_v23  ;;  %v615_v45 = vmul.f32 %v1797_v43, %v1648_v25  ;;  %v1838_v5 = vld [vmem:[%s1601_s2 + $0xc9] sm:$0xff]  ;;  %v1841_v43 = vld [vmem:[%s1601_s2 + $0x20] sm:$0xff] }
  0x7d   : > { %2185 = vst [vmem:[#allocation34_spill] sm:$0xff] %v1825_v46  ;;  %v483_v49 = vadd.f32 %v467_v0, %v434_v27  ;;  %v664_v54 = vmul.f32 %v1655_v30, %v1800_v61  ;;  %v339_v58 = vadd.f32 %v323_v34, %v290_v12  ;;  %v422_v55 = vmul.f32 %v1809_v33, %v1622_v14  ;;  %v1844_v56 = vld [vmem:[%s1601_s2 + $0xca] sm:$0xff]  ;;  %v1850_v34 = vld [vmem:[%s1601_s2 + $0x38] sm:$0xff] }
  0x7e   : > { %2186 = vst [vmem:[#allocation35_spill] sm:$0xff] %v1828_v47  ;;  %v675_v51 = vadd.f32 %v659_v18, %v626_v28  ;;  %v278_v0 = vmul.f32 %v1607_v7, %v261_v50  ;;  %v311_v27 = vmul.f32 %v1612_v9, %v294_v37  ;;  %v360_v12 = vmul.f32 %v1617_v11, %v343_v42  ;;  %v1857_v28 = vld [vmem:[%s1601_s2 + $0x21] sm:$0xff] }
  0x7f   : > { %2187 = vst [vmem:[#allocation36_spill] sm:$0xff] %v1835_v62  ;;  %v532_v61 = vadd.f32 %v516_v2, %v483_v49  ;;  %v388_v33 = vadd.f32 %v372_v40, %v339_v58  ;;  %v471_v10 = vmul.f32 %v1825_v46, %v1627_v16  ;;  %v520_v18 = vmul.f32 %v1828_v47, %v1629_v17  ;;  %v1863_v50 = vld [vmem:[%s1601_s2 + $0x3a] sm:$0xff]  ;;  %v1872_v49 = vld [vmem:[%s1601_s2 + $0x22] sm:$0xff] }
  0x80   : > { %2188 = vst [vmem:[#allocation37_spill] sm:$0xff] %v1838_v5  ;;  %735 = vmatmul.f32.vlgmr.msra.gmra.mxu1 %v675_v51  ;;  %v570_v37 = vmul.f32 %v1835_v62, %v1643_v23  ;;  %v619_v2 = vmul.f32 %v1838_v5, %v1648_v25  ;;  %v327_v40 = vadd.f32 %v311_v27, %v278_v0 }
  0x81   : > { %2189 = vst [vmem:[#allocation38_spill] sm:$0xff] %v1841_v43  ;;  %v410_v42 = vmul.f32 %v1841_v43, %v1622_v14  ;;  %v582_v58 = vadd.f32 %v566_v44, %v532_v61  ;;  %v438_v47 = vadd.f32 %v422_v55, %v388_v33  ;;  %v668_v46 = vmul.f32 %v1655_v30, %v1844_v56  ;;  %v1888_v33 = vld [vmem:[%s1601_s2 + $0x51] sm:$0xff] }
  0x82   : > { %2190 = vst [vmem:[#allocation39_spill] sm:$0xff] %v1844_v56  ;;  %v282_v51 = vmul.f32 %v1850_v34, %v1607_v7  ;;  %v376_v62 = vadd.f32 %v360_v12, %v327_v40  ;;  %v459_v0 = vmul.f32 %v1857_v28, %v1627_v16  ;;  %v315_v27 = vmul.f32 %v1860_v39, %v1612_v9 }
  0x83   : > { %2191 = vst [vmem:[#allocation40_spill] sm:$0xff] %v1857_v28  ;;  %v364_v61 = vmul.f32 %v1863_v50, %v1617_v11  ;;  %v631_v44 = vadd.f32 %v615_v45, %v582_v58  ;;  %v487_v55 = vadd.f32 %v471_v10, %v438_v47  ;;  %v508_v56 = vmul.f32 %v1872_v49, %v1629_v17 }
  0x84   : > { %2192 = vst [vmem:[#allocation41_spill] sm:$0xff] %v1863_v50  ;;  %v558_v5 = vmul.f32 %v1850_v34, %v1643_v23  ;;  %v426_v12 = vadd.f32 %v410_v42, %v376_v62  ;;  %v607_v40 = vmul.f32 %v1860_v39, %v1648_v25  ;;  %v331_v28 = vadd.f32 %v315_v27, %v282_v51 }
  0x85   : > { %v414_v43 = vmul.f32 %v1879_v35, %v1622_v14  ;;  %2193 = vst [vmem:[#allocation42_spill] sm:$0xff] %v1899_v8  ;;  %v680_v6 = vadd.f32 %v664_v54, %v631_v44  ;;  %v536_v31 = vadd.f32 %v520_v18, %v487_v55  ;;  %v463_v10 = vmul.f32 %v1888_v33, %v1627_v16 }
  0x86   : > { %v287_v45 = vmul.f32 %v1620_v13, %v1607_v7  ;;  %v475_v47 = vadd.f32 %v459_v0, %v426_v12  ;;  %v380_v58 = vadd.f32 %v364_v61, %v331_v28  ;;  %v320_v62 = vmul.f32 %v1625_v15, %v1612_v9 }
  0x87   : > { %v369_v42 = vmul.f32 %v1638_v21, %v1617_v11  ;;  %750 = vmatmul.f32.gmra.mxu2 %v680_v6  ;;  %v586_v51 = vadd.f32 %v570_v37, %v536_v31  ;;  %v656_v54 = vmul.f32 %v1655_v30, %v1863_v50  ;;  %v512_v18 = vmul.f32 %v1899_v8, %v1629_v17 }
  0x88   : > { %v562_v27 = vmul.f32 %v1643_v23, %v1759_v1  ;;  %v524_v44 = vadd.f32 %v508_v56, %v475_v47  ;;  %v430_v0 = vadd.f32 %v414_v43, %v380_v58  ;;  %v336_v28 = vadd.f32 %v320_v62, %v287_v45 }
  0x89   : > { %v419_v61 = vmul.f32 %v1641_v22, %v1622_v14  ;;  %v635_v55 = vadd.f32 %v619_v2, %v586_v51  ;;  %v611_v6 = vmul.f32 %v1648_v25, %v1762_v4  ;;  %v468_v31 = vmul.f32 %v1646_v24, %v1627_v16 }
  0x8a   : > { %v291_v37 = vmul.f32 %v1660_v32, %v1607_v7  ;;  %v574_v12 = vadd.f32 %v558_v5, %v524_v44  ;;  %v479_v50 = vadd.f32 %v463_v10, %v430_v0  ;;  %v385_v8 = vadd.f32 %v369_v42, %v336_v28  ;;  %v1009_v28 = vld [vmem:[%s1601_s2 + $0xd9] sm:$0xff] }
  0x8b   : > { %v324_v56 = vmul.f32 %v1669_v36, %v1612_v9  ;;  %v684_v43 = vadd.f32 %v668_v46, %v635_v55  ;;  %v517_v22 = vmul.f32 %v1651_v26, %v1629_v17  ;;  %v373_v2 = vmul.f32 %v1676_v41, %v1617_v11 }
  0x8c   : > { %v423_v24 = vmul.f32 %v1692_v52, %v1622_v14  ;;  %v623_v45 = vadd.f32 %v607_v40, %v574_v12  ;;  %v528_v47 = vadd.f32 %v512_v18, %v479_v50  ;;  %v435_v58 = vadd.f32 %v419_v61, %v385_v8  ;;  %v993_v40 = vld [vmem:[%s1601_s2 + $0xd8] sm:$0xff] }
  0x8d   : > { %v340_v5 = vadd.f32 %v324_v56, %v291_v37  ;;  %762 = vmatmul.f32.gmra.mxu3 %v684_v43  ;;  %v660_v10 = vmul.f32 %v1655_v30, %v1768_v29  ;;  %v567_v46 = vmul.f32 %v1660_v32, %v1643_v23  ;;  %v472_v26 = vmul.f32 %v1695_v53, %v1627_v16 }
  0x8e   : > { %v672_v62 = vadd.f32 %v656_v54, %v623_v45  ;;  %v578_v42 = vadd.f32 %v562_v27, %v528_v47  ;;  %v484_v51 = vadd.f32 %v468_v31, %v435_v58  ;;  %v616_v8 = vmul.f32 %v1669_v36, %v1648_v25  ;;  %v2195_v47 = vld [vmem:[#allocation23_spill] sm:$0xff] }
  0x8f   : > { %v389_v52 = vadd.f32 %v373_v2, %v340_v5  ;;  %v279_v50 = vmul.f32 %v1701_v57, %v1607_v7  ;;  %v312_v18 = vmul.f32 %v1709_v63, %v1612_v9  ;;  %v361_v32 = vmul.f32 %v1716_v3, %v1617_v11  ;;  %v1025_v57 = vld [vmem:[%s1601_s2 + $0xda] sm:$0xff] }
  0x90   : > { %726 = vmatmul.f32.gmra.mxu0 %v672_v62  ;;  %v627_v53 = vadd.f32 %v611_v6, %v578_v42  ;;  %v533_v54 = vadd.f32 %v517_v22, %v484_v51  ;;  %v521_v44 = vmul.f32 %v1704_v60, %v1629_v17  ;;  %v665_v0 = vmul.f32 %v1655_v30, %v1676_v41 }
  0x91   : > { %v439_v27 = vadd.f32 %v423_v24, %v389_v52  ;;  %v571_v36 = vmul.f32 %v993_v40, %v1643_v23  ;;  %v328_v61 = vadd.f32 %v312_v18, %v279_v50  ;;  %v411_v63 = vmul.f32 %v1721_v19, %v1622_v14  ;;  %v2197_v52 = vld [vmem:[#allocation27_spill] sm:$0xff] }
  0x92   : > { %v676_v55 = vadd.f32 %v660_v10, %v627_v53  ;;  %v583_v3 = vadd.f32 %v567_v46, %v533_v54  ;;  %v460_v6 = vmul.f32 %v1724_v20, %v1627_v16  ;;  %v283_v60 = vmul.f32 %v1736_v38, %v1607_v7  ;;  %v2194_v20 = vld [vmem:[#allocation26_spill] sm:$0xff]  ;;  %v2199_v53 = vld [vmem:[#allocation25_spill] sm:$0xff] }
  0x93   : > { %v488_v31 = vadd.f32 %v472_v26, %v439_v27  ;;  %v377_v37 = vadd.f32 %v361_v32, %v328_v61  ;;  %v316_v41 = vmul.f32 %v1745_v48, %v1612_v9  ;;  %v365_v12 = vmul.f32 %v1754_v59, %v1617_v11  ;;  %v2196_v26 = vld [vmem:[#allocation24_spill] sm:$0xff] }
  0x94   : > { %738 = vmatmul.f32.gmra.mxu1 %v676_v55  ;;  %v632_v56 = vadd.f32 %v616_v8, %v583_v3  ;;  %v620_v19 = vmul.f32 %v1009_v28, %v1648_v25  ;;  %v669_v22 = vmul.f32 %v1655_v30, %v1025_v57  ;;  %v509_v24 = vmul.f32 %v2194_v20, %v1629_v17  ;;  %v2198_v8 = vld [vmem:[#allocation28_spill] sm:$0xff]  ;;  %v2201_v28 = vld [vmem:[#allocation29_spill] sm:$0xff] }
  0x95   : > { %v537_v43 = vadd.f32 %v521_v44, %v488_v31  ;;  %v427_v2 = vadd.f32 %v411_v63, %v377_v37  ;;  %v332_v45 = vadd.f32 %v316_v41, %v283_v60  ;;  %v415_v58 = vmul.f32 %v1622_v14, %v2195_v47  ;;  %v2203_v60 = vld [vmem:[#allocation33_spill] sm:$0xff] }
  0x96   : > { %v681_v5 = vadd.f32 %v665_v0, %v632_v56  ;;  %v559_v46 = vmul.f32 %v1736_v38, %v1643_v23  ;;  %v464_v62 = vmul.f32 %v1627_v16, %v2196_v26  ;;  %v288_v40 = vmul.f32 %v2197_v52, %v1607_v7  ;;  %v2200_v38 = vld [vmem:[#allocation30_spill] sm:$0xff] }
  0x97   : > { %v587_v10 = vadd.f32 %v571_v36, %v537_v43  ;;  %v476_v42 = vadd.f32 %v460_v6, %v427_v2  ;;  %v381_v51 = vadd.f32 %v365_v12, %v332_v45  ;;  %v321_v50 = vmul.f32 %v2198_v8, %v1612_v9  ;;  %v2204_v56 = vld [vmem:[#allocation34_spill] sm:$0xff]  ;;  %v2205_v43 = vld [vmem:[#allocation35_spill] sm:$0xff] }
  0x98   : > { %753 = vmatmul.f32.gmra.mxu2 %v681_v5  ;;  %v608_v32 = vmul.f32 %v1745_v48, %v1648_v25  ;;  %v513_v54 = vmul.f32 %v1629_v17, %v2199_v53  ;;  %v370_v27 = vmul.f32 %v2200_v38, %v1617_v11  ;;  %v420_v57 = vmul.f32 %v2201_v28, %v1622_v14  ;;  %v2202_v48 = vld [vmem:[#allocation31_spill] sm:$0xff] }
  0x99   : > { %v636_v18 = vadd.f32 %v620_v19, %v587_v10  ;;  %v525_v44 = vadd.f32 %v509_v24, %v476_v42  ;;  %v431_v0 = vadd.f32 %v415_v58, %v381_v51  ;;  %v337_v36 = vadd.f32 %v321_v50, %v288_v40  ;;  %v2206_v24 = vld [vmem:[#allocation32_spill] sm:$0xff]  ;;  %v2208_v42 = vld [vmem:[#allocation38_spill] sm:$0xff]  ;;  %v2209_v50 = vld [vmem:[#allocation37_spill] sm:$0xff] }
  0x9a   : > { %v657_v63 = vmul.f32 %v1655_v30, %v1754_v59  ;;  %v563_v55 = vmul.f32 %v1620_v13, %v1643_v23  ;;  %v469_v3 = vmul.f32 %v2202_v48, %v1627_v16  ;;  %v292_v41 = vmul.f32 %v2203_v60, %v1607_v7 }
  0x9b   : > { %v685_v61 = vadd.f32 %v669_v22, %v636_v18  ;;  %v575_v31 = vadd.f32 %v559_v46, %v525_v44  ;;  %v480_v6 = vadd.f32 %v464_v62, %v431_v0  ;;  %v386_v37 = vadd.f32 %v370_v27, %v337_v36  ;;  %v994_v62 = vld [vmem:[%s1601_s2 + $0xe0] sm:$0xff] }
  0x9c   : > { %v612_v12 = vmul.f32 %v1625_v15, %v1648_v25  ;;  %v661_v59 = vmul.f32 %v1655_v30, %v1638_v21  ;;  %v325_v13 = vmul.f32 %v2204_v56, %v1612_v9  ;;  %v374_v19 = vmul.f32 %v2205_v43, %v1617_v11  ;;  %v2207_v21 = vld [vmem:[#allocation36_spill] sm:$0xff]  ;;  %v2211_v36 = vld [vmem:[#allocation39_spill] sm:$0xff] }
  0x9d   : > { %765 = vmatmul.f32.gmra.mxu3 %v685_v61  ;;  %v624_v22 = vadd.f32 %v608_v32, %v575_v31  ;;  %v529_v2 = vadd.f32 %v513_v54, %v480_v6  ;;  %v436_v20 = vadd.f32 %v420_v57, %v386_v37  ;;  %v518_v45 = vmul.f32 %v2206_v24, %v1629_v17  ;;  %v2210_v32 = vld [vmem:[#allocation40_spill] sm:$0xff] }
  0x9e   : > { %v568_v47 = vmul.f32 %v2203_v60, %v1643_v23  ;;  %v617_v15 = vmul.f32 %v2204_v56, %v1648_v25  ;;  %v341_v58 = vadd.f32 %v325_v13, %v292_v41  ;;  %v424_v5 = vmul.f32 %v2207_v21, %v1622_v14  ;;  %v1026_v60 = vld [vmem:[%s1601_s2 + $0xe2] sm:$0xff] }
  0x9f   : > { %v673_v10 = vadd.f32 %v657_v63, %v624_v22  ;;  %v579_v46 = vadd.f32 %v563_v55, %v529_v2  ;;  %v485_v26 = vadd.f32 %v469_v3, %v436_v20  ;;  %v280_v51 = vmul.f32 %v2208_v42, %v1607_v7  ;;  %v1010_v63 = vld [vmem:[%s1601_s2 + $0xe1] sm:$0xff]  ;;  %s1326_s2 = scalar_lea.hbm %s2126_s4, 512 }
  0xa0   : > { %v390_v40 = vadd.f32 %v374_v19, %v341_v58  ;;  %v473_v18 = vmul.f32 %v2209_v50, %v1627_v16  ;;  %v313_v53 = vmul.f32 %v2210_v32, %v1612_v9  ;;  %v362_v54 = vmul.f32 %v1872_v49, %v1617_v11  ;;  %v2212_v56 = vld [vmem:[#allocation42_spill] sm:$0xff]  ;;  %p1328_p4 = scmp.lt.s32.totalorder %s1326_s2, %s1322_s8 }
  0xa1   : > { %729 = vmatmul.f32.gmra.mxu0 %v673_v10  ;;  %v628_v27 = vadd.f32 %v612_v12, %v579_v46  ;;  %v534_v44 = vadd.f32 %v518_v45, %v485_v26  ;;  %v666_v0 = vmul.f32 %v1655_v30, %v2205_v43  ;;  %v522_v28 = vmul.f32 %v2211_v36, %v1629_v17 }
  0xa2   : > { %v440_v57 = vadd.f32 %v424_v5, %v390_v40  ;;  %v572_v61 = vmul.f32 %v994_v62, %v1643_v23  ;;  %v329_v55 = vadd.f32 %v313_v53, %v280_v51  ;;  %v412_v48 = vmul.f32 %v1850_v34, %v1622_v14  ;;  %p1329_p5 = por %p1328_p4, %p1327_p2 }
  0xa3   : > { %v677_v3 = vadd.f32 %v661_v59, %v628_v27  ;;  %v584_v49 = vadd.f32 %v568_v47, %v534_v44  ;;  %v461_v31 = vmul.f32 %v1860_v39, %v1627_v16  ;;  %v284_v6 = vmul.f32 %v1879_v35, %v1607_v7  ;;  %v2213_v59 = vld [vmem:[#allocation41_spill] sm:$0xff] }
  0xa4   : > { %v489_v37 = vadd.f32 %v473_v18, %v440_v57  ;;  %v378_v41 = vadd.f32 %v362_v54, %v329_v55  ;;  %v317_v12 = vmul.f32 %v1888_v33, %v1612_v9  ;;  %v366_v13 = vmul.f32 %v2212_v56, %v1617_v11  ;;  %p1330_p6 = pnand %p1329_p5, %p1325_p1 }
  0xa5   : > { %741 = vmatmul.f32.gmra.mxu1 %v677_v3  ;;  %v633_v43 = vadd.f32 %v617_v15, %v584_v49  ;;  %v621_v34 = vmul.f32 %v1010_v63, %v1648_v25  ;;  %v510_v19 = vmul.f32 %v2213_v59, %v1629_v17  ;;  %v416_v7 = vmul.f32 %v1622_v14, %v1759_v1 }
  0xa6   : > { %v538_v39 = vadd.f32 %v522_v28, %v489_v37  ;;  %v428_v22 = vadd.f32 %v412_v48, %v378_v41  ;;  %v333_v2 = vadd.f32 %v317_v12, %v284_v6  ;;  %v670_v24 = vmul.f32 %v1655_v30, %v1026_v60 }
  0xa7   : > { %v682_v20 = vadd.f32 %v666_v0, %v633_v43  ;;  %v560_v9 = vmul.f32 %v1879_v35, %v1643_v23  ;;  %v465_v15 = vmul.f32 %v1627_v16, %v1762_v4  ;;  %v609_v58 = vmul.f32 %v1888_v33, %v1648_v25 }
  0xa8   : > { %v588_v11 = vadd.f32 %v572_v61, %v538_v39  ;;  %v477_v45 = vadd.f32 %v461_v31, %v428_v22  ;;  %v382_v47 = vadd.f32 %v366_v13, %v333_v2  ;;  %v514_v14 = vmul.f32 %v1629_v17, %v1768_v29 }
  0xa9   : > { %756 = vmatmul.f32.gmra.mxu2 %v682_v20  ;;  %v658_v1 = vmul.f32 %v1655_v30, %v2212_v56  ;;  %v564_v16 = vmul.f32 %v2197_v52, %v1643_v23  ;;  %v613_v33 = vmul.f32 %v2198_v8, %v1648_v25  ;;  %v662_v17 = vmul.f32 %v1655_v30, %v2200_v38  ;;  %v1189_v23 = vld [vmem:[%s2125_s3] ss:$0 sm:$0xff] }
  0xaa   : > { %v637_v21 = vadd.f32 %v621_v34, %v588_v11  ;;  %v526_v5 = vadd.f32 %v510_v19, %v477_v45  ;;  %v432_v10 = vadd.f32 %v416_v7, %v382_v47 }
  0xac   : > { %v686_v35 = vadd.f32 %v670_v24, %v637_v21  ;;  %v576_v46 = vadd.f32 %v560_v9, %v526_v5  ;;  %v481_v26 = vadd.f32 %v465_v15, %v432_v10 }
  0xae   : > { %768 = vmatmul.f32.gmra.mxu3 %v686_v35  ;;  %v625_v4 = vadd.f32 %v609_v58, %v576_v46  ;;  %v530_v62 = vadd.f32 %v514_v14, %v481_v26 }
  0xb0   : > { %v674_v42 = vadd.f32 %v658_v1, %v625_v4  ;;  %v580_v51 = vadd.f32 %v564_v16, %v530_v62 }
  0xb2   : > { %732 = vmatmul.f32.gmra.mxu0 %v674_v42  ;;  %v629_v29 = vadd.f32 %v613_v33, %v580_v51 }
  0xb4   : > { %v678_v40 = vadd.f32 %v662_v17, %v629_v29 }
  0xb6   : > { %744 = vmatmul.f32.gmra.mxu1 %v678_v40 }
  0xf9   : > { %v724_v52 = vpop.f32.mrf.mxu0 }
  0xfa   : > { %v725_v50 = vadd.f32 %v1189_v23, %v724_v52 }
  0xfc   : > { %772 = vst [vmem:[%s1599_s1] sm:$0xff] %v725_v50 }
  0xfd   : > { %v748_v25 = vpop.f32.mrf.mxu2  ;;  %v760_v8 = vpop.f32.mrf.mxu3 }
  0xfe   : > { %v736_v18 = vpop.f32.mrf.mxu1  ;;  %v749_v32 = vadd.f32 %v1189_v23, %v748_v25  ;;  %v761_v30 = vadd.f32 %v1189_v23, %v760_v8 }
  0xff   : > { %v737_v38 = vadd.f32 %v1189_v23, %v736_v18 }
 0x100   : > { %780 = vst [vmem:[%s1599_s1 + $0x40] sm:$0xff] %v749_v32 }
 0x101   : > { %776 = vst [vmem:[%s1599_s1 + $0x20] sm:$0xff] %v737_v38 }
 0x102   : > { %784 = vst [vmem:[%s1599_s1 + $0x60] sm:$0xff] %v761_v30 }
 0x10a   : > { %v751_v53 = vpop.f32.mrf.mxu2 }
 0x10b   : > { %v752_v54 = vadd.f32 %v1189_v23, %v751_v53 }
 0x10d   : > { %v727_v27 = vpop.f32.mrf.mxu0  ;;  %781 = vst [vmem:[%s1599_s1 + $0x48] sm:$0xff] %v752_v54 }
 0x10e   : > { %v728_v44 = vadd.f32 %v1189_v23, %v727_v27 }
 0x110   : > { %773 = vst [vmem:[%s1599_s1 + $0x8] sm:$0xff] %v728_v44  ;;  %v763_v0 = vpop.f32.mrf.mxu3 }
 0x111   : > { %v739_v36 = vpop.f32.mrf.mxu1  ;;  %v764_v28 = vadd.f32 %v1189_v23, %v763_v0 }
 0x112   : > { %v740_v57 = vadd.f32 %v1189_v23, %v739_v36 }
 0x113   : > { %785 = vst [vmem:[%s1599_s1 + $0x68] sm:$0xff] %v764_v28 }
 0x114   : > { %777 = vst [vmem:[%s1599_s1 + $0x28] sm:$0xff] %v740_v57 }
 0x11b   : > { %v754_v61 = vpop.f32.mrf.mxu2 }
 0x11c   : > { %v755_v63 = vadd.f32 %v1189_v23, %v754_v61 }
 0x11e   : > { %v730_v55 = vpop.f32.mrf.mxu0  ;;  %782 = vst [vmem:[%s1599_s1 + $0x50] sm:$0xff] %v755_v63 }
 0x11f   : > { %v731_v48 = vadd.f32 %v1189_v23, %v730_v55 }
 0x120   : > { %v766_v3 = vpop.f32.mrf.mxu3 }
 0x121   : > { %v767_v49 = vadd.f32 %v1189_v23, %v766_v3  ;;  %774 = vst [vmem:[%s1599_s1 + $0x10] sm:$0xff] %v731_v48 }
 0x122   : > { %v742_v31 = vpop.f32.mrf.mxu1 }
 0x123   : > { %786 = vst [vmem:[%s1599_s1 + $0x70] sm:$0xff] %v767_v49  ;;  %v743_v6 = vadd.f32 %v1189_v23, %v742_v31 }
 0x125   : > { %778 = vst [vmem:[%s1599_s1 + $0x30] sm:$0xff] %v743_v6 }
 0x12c   : > { %v757_v37 = vpop.f32.mrf.mxu2 }
 0x12d   : > { %v758_v60 = vadd.f32 %v1189_v23, %v757_v37 }
 0x12f   : > { %v733_v41 = vpop.f32.mrf.mxu0  ;;  %783 = vst [vmem:[%s1599_s1 + $0x58] sm:$0xff] %v758_v60 }
 0x130   : > { %v734_v12 = vadd.f32 %v1189_v23, %v733_v41 }
 0x131   : > { %v769_v56 = vpop.f32.mrf.mxu3 }
 0x132   : > { %775 = vst [vmem:[%s1599_s1 + $0x18] sm:$0xff] %v734_v12  ;;  %v770_v13 = vadd.f32 %v1189_v23, %v769_v56 }
 0x133   : > { %v745_v43 = vpop.f32.mrf.mxu1 }
 0x134   : > { %v746_v34 = vadd.f32 %v1189_v23, %v745_v43  ;;  %787 = vst [vmem:[%s1599_s1 + $0x78] sm:$0xff] %v770_v13 }
 0x136   : > { %779 = vst [vmem:[%s1599_s1 + $0x38] sm:$0xff] %v746_v34 }
 0x137   : > { %1333 = shalt.err (!%p1330_p6)
}
 0x138   : > { %s1417_s1 = smov 128   ;;  %s1418_s25 = smov 8  }
 0x139   : > { %1097 = dma.vmem_to_hbm [thread:$0]  (%p1496_p3), %s805_s23, 2048, %s807_s9, %s789_s19, %s1417_s1, %s1417_s1, %s1418_s25  }
 0x13a PF: > { %p1116_p7 = scmp.ge.s32.totalorder %s1410_s22, 2  ;;  %s821_s26 = sand.u32 1, %s1382_s15  }
 0x13b   : > { %s822_s10 = scalar_lea.sflag [#allocation6], %s821_s26 }
 0x13c   : > { %p1107_p9 = pnand %p1116_p7, %p1505_p8 }
 0x13e   : > { %p1108_p10 = pneg %p1107_p9 }
 0x140   : > { %1377 = dma.done.wait (%p1108_p10), %s822_s10, 2048  }
 0x141   : > { %1379 = vsyncadd (%p1108_p10), %s822_s10, 4294965248  ;;  %s19_s22 = sadd.s32 1, %s1410_s22   ;;  %s2215_s19 = sld [smem:[#allocation20_spill]] }
 0x142   : > { %p16_p11 = scmp.ge.s32.totalorder %s19_s22, 6   ;;  %s2216_s29 = sld [smem:[#allocation21_spill]] }
 0x143   : > { %s2217_s21 = sld [smem:[#allocation22_spill]]  ;;  %s2218_s15 = smov %s1386_s16 }
 0x144   : > { %s2219_s16 = smov %s1390_s17  ;;  %s2220_s17 = smov %s1526_s12 }
 0x145   : > { %s2221_s18 = smov %s1402_s20  ;;  %18 = sbr.rel (!%p16_p11) target bundleno = 10 (0xa), region = 98 }
 0x148   : > { %s2222_s20 = smov %s2216_s29 }
 0x14a   :  { %828 = vsyncpa [#allocation5], 1 }
 0x14b   :  { %830 = vsyncpa [#allocation5 + $0x1], 1 }
 0x14c   :  { %831 = vsyncpa [#allocation8], 1 }
 0x14d   :  { %832 = vsyncpa [#allocation6], 1 }
 0x14e   :  { %834 = vsyncpa [#allocation6 + $0x1], 1 }
 0x14f   :  { %835 = vsyncmov [#allocation3] }
 0x152   :  { %s836_s30 = vpop.sfrf %835 }
 0x153   :  { %p1034_p3 = scmp.ne.s32.totalorder %s836_s30, 0 }
 0x155   :  { %840 = shalt.err (%p1034_p3)  }
 0x156   :  { %842 = vsyncmov [#allocation3 + $0x1] }
 0x159   :  { %s843_s12 = vpop.sfrf %842 }
 0x15a   :  { %p1035_p8 = scmp.ne.s32.totalorder %s843_s12, 0 }
 0x15c   :  { %847 = shalt.err (%p1035_p8)  }

</bundles_post_ra>
